<compile_context>
chip_gen: v7x
topology: tpu7x:2x2x1
jax: 0.10.0
libtpu: 0.0.40
codegen_flags: <defaults>
</compile_context>

<pallas_src>
import functools

import jax
import jax.numpy as jnp
from jax.experimental import pallas as pl
from jax.experimental.pallas import tpu as pltpu

LANE = 128          # vreg lane width: feature dims are padded to this
SUBLANE = 8         # vreg sublane width: batch tiles are multiples of this
NEG_BIAS = -1e30    # masks padded logit lanes out of the softmax


def _round_up(x, m):
    return (x + m - 1) // m * m


def _pad2d(a, rows, cols, fill=0.0):
    r, c = a.shape
    return jnp.pad(a, ((0, rows - r), (0, cols - c)), constant_values=fill)


def actor_kernel(x_ref, w1_ref, b1_ref, w2_ref, b2_ref, w3_ref, b3_ref, probs_ref):
    """Fused 3-layer MLP + softmax for one batch tile.

    x: (TB, Dp) bf16. Weights bf16 (lane-padded), biases f32 (padded logit
    lanes of b3 are a large negative number). All matmuls accumulate in f32
    on the MXU; softmax math stays f32 (v5e has no bf16 VPU/EUP).
    """
    x = x_ref[...]

    # Layer 1: Linear + ReLU
    h1 = jnp.dot(x, w1_ref[...], preferred_element_type=jnp.float32) + b1_ref[...]
    h1 = jnp.maximum(h1, 0.0)

    # Layer 2: Linear + ReLU
    h2 = jnp.dot(h1.astype(w2_ref.dtype), w2_ref[...],
                 preferred_element_type=jnp.float32) + b2_ref[...]
    h2 = jnp.maximum(h2, 0.0)

    # Layer 3: Linear (logits); padded lanes get NEG_BIAS via b3.
    logits = jnp.dot(h2.astype(w3_ref.dtype), w3_ref[...],
                     preferred_element_type=jnp.float32) + b3_ref[...]

    # Numerically-stable softmax along the lane dim.
    m = jnp.max(logits, axis=-1, keepdims=True)
    e = jnp.exp(logits - m)                      # padded lanes -> exp(-huge) = 0
    denom = jnp.sum(e, axis=-1, keepdims=True)
    probs_ref[...] = (e * pl.reciprocal(denom, approx=True)).astype(probs_ref.dtype)


def prepare_actor_params(params):
    """One-time layout plumbing: pad feature dims to 128 lanes, cast weights to
    bf16, keep biases f32, and poison the padded output-logit lanes of b3 so
    the in-kernel softmax ignores them."""
    w1, b1, w2, b2, w3, b3 = params
    din, h1 = w1.shape
    _, h2 = w2.shape
    _, dout = w3.shape
    dp, h1p, h2p, op = (_round_up(d, LANE) for d in (din, h1, h2, dout))

    padded = (
        _pad2d(w1, dp, h1p).astype(jnp.bfloat16),
        _pad2d(b1.reshape(1, -1), 1, h1p).astype(jnp.float32),
        _pad2d(w2, h1p, h2p).astype(jnp.bfloat16),
        _pad2d(b2.reshape(1, -1), 1, h2p).astype(jnp.float32),
        _pad2d(w3, h2p, op).astype(jnp.bfloat16),
        _pad2d(b3.reshape(1, -1), 1, op, fill=NEG_BIAS).astype(jnp.float32),
    )
    return padded, dout


@functools.partial(jax.jit, static_argnums=(2,), static_argnames=("block_batch",))
def actor_forward(state, padded_params, action_size, *, block_batch=512):
    """Batch-tiled pallas_call; weights stay resident in VMEM across the grid."""
    w1, b1, w2, b2, w3, b3 = padded_params
    batch, din = state.shape
    dp, h1p = w1.shape
    h2p, op = w3.shape

    # Batch tile: as large as reasonable (pipeline overlap), multiple of 8.
    tb = min(block_batch, max(SUBLANE, _round_up(batch, SUBLANE)))
    batch_p = _round_up(batch, tb)

    # Pad batch + feature dims once, cast activations to bf16 once.
    x = _pad2d(state, batch_p, dp).astype(jnp.bfloat16)

    grid = (batch_p // tb,)
    resident = lambda arr: pl.BlockSpec(arr.shape, lambda i: (0, 0))

    flops = 2 * batch_p * (dp * h1p + h1p * h2p + h2p * op)
    bytes_accessed = (
        int(x.size) * 2
        + sum(int(a.size) * a.dtype.itemsize for a in padded_params)
        + batch_p * op * 4
    )

    out = pl.pallas_call(
        actor_kernel,
        out_shape=jax.ShapeDtypeStruct((batch_p, op), jnp.float32),
        grid=grid,
        in_specs=[
            pl.BlockSpec((tb, dp), lambda i: (i, 0)),   # activation tile
            resident(w1), resident(b1),
            resident(w2), resident(b2),
            resident(w3), resident(b3),
        ],
        out_specs=pl.BlockSpec((tb, op), lambda i: (i, 0)),
        compiler_params=pltpu.CompilerParams(
            dimension_semantics=("parallel",),          # 2x on v7x dual-TC
            vmem_limit_bytes=32 << 20,                  # safe on v7x's 64 MiB VMEM
        ),
        cost_estimate=pl.CostEstimate(
            flops=flops,
            transcendentals=batch_p * op,
            bytes_accessed=bytes_accessed,
        ),
    )(x, w1, b1, w2, b2, w3, b3)

    # Strip batch padding and padded action lanes.
    return out[:batch, :action_size]


def init_actor_params(key, input_size, output_size, hidden_size):
    """Deterministic init matching nn.Linear's U(-1/sqrt(fan_in), 1/sqrt(fan_in)).
    Weights stored [in, out] (transposed from PyTorch), biases 1-D."""
    k1, k2, k3, k4, k5, k6 = jax.random.split(key, 6)

    def uniform(k, shape, fan_in):
        bound = 1.0 / jnp.sqrt(float(fan_in))
        return jax.random.uniform(k, shape, jnp.float32, -bound, bound)

    w1 = uniform(k1, (input_size, hidden_size[0]), input_size)
    b1 = uniform(k2, (hidden_size[0],), input_size)
    w2 = uniform(k3, (hidden_size[0], hidden_size[1]), hidden_size[0])
    b2 = uniform(k4, (hidden_size[1],), hidden_size[0])
    w3 = uniform(k5, (hidden_size[1], output_size), hidden_size[1])
    b3 = uniform(k6, (output_size,), hidden_size[1])
    return (w1, b1, w2, b2, w3, b3)


def actor_ref(state, params):
    """Pure-JAX f32 reference (matches the PyTorch module's forward)."""
    w1, b1, w2, b2, w3, b3 = params
    h1 = jax.nn.relu(state @ w1 + b1)
    h2 = jax.nn.relu(h1 @ w2 + b2)
    logits = h2 @ w3 + b3
    return jax.nn.softmax(logits, axis=-1)


if __name__ == "__main__":
    key = jax.random.PRNGKey(0)
    k_params, k_state = jax.random.split(key)

    # Module-consistent shapes: state_size=16, hidden=[32, 32], actions=8.
    # Batch is large enough to fill sublanes and exercise the 2-step grid.
    batch = 1000
    input_size = 16
    output_size = 8
    hidden_size = (32, 32)

    params = init_actor_params(k_params, input_size, output_size, hidden_size)
    state = jax.random.normal(k_state, (batch, input_size), jnp.float32)

    padded_params, action_size = prepare_actor_params(params)

    probs = actor_forward(state, padded_params, action_size, block_batch=512)
    probs = jax.block_until_ready(probs)

    assert probs.shape == (batch, output_size)

    # Sanity checks: bf16 weights + approx reciprocal => loose-ish tolerances.
    ref = actor_ref(state, params)
    assert jnp.allclose(probs, ref, atol=2e-2), "mismatch vs f32 reference"
    assert jnp.allclose(jnp.sum(probs, axis=-1), 1.0, atol=2e-3), "probs do not sum to 1"

    print("KERNEL_OK")
</pallas_src>

<mosaic_0001>
module attributes {stable_mosaic.version = 11 : i64} {
  func.func @actor_kernel(%arg0: i32, %arg1: memref<512x128xbf16, #tpu.memory_space<vmem>>, %arg2: memref<128x128xbf16, #tpu.memory_space<vmem>>, %arg3: memref<1x128xf32, #tpu.memory_space<vmem>>, %arg4: memref<128x128xbf16, #tpu.memory_space<vmem>>, %arg5: memref<1x128xf32, #tpu.memory_space<vmem>>, %arg6: memref<128x128xbf16, #tpu.memory_space<vmem>>, %arg7: memref<1x128xf32, #tpu.memory_space<vmem>>, %arg8: memref<512x128xf32, #tpu.memory_space<vmem>>) attributes {dimension_semantics = [#tpu.dimension_semantics<parallel>], iteration_bounds = array<i64: 2>, scalar_prefetch = 0 : i64, scratch_operands = 0 : i64, tpu.core_type = #tpu.core_type<tc>, window_params = [{transform_indices = @transform_0, window_bounds = array<i64: 512, 128>}, {pipeline_mode = #tpu.pipeline_mode<synchronous>, transform_indices = @transform_1, window_bounds = array<i64: 128, 128>}, {pipeline_mode = #tpu.pipeline_mode<synchronous>, transform_indices = @transform_2, window_bounds = array<i64: 1, 128>}, {pipeline_mode = #tpu.pipeline_mode<synchronous>, transform_indices = @transform_3, window_bounds = array<i64: 128, 128>}, {pipeline_mode = #tpu.pipeline_mode<synchronous>, transform_indices = @transform_4, window_bounds = array<i64: 1, 128>}, {pipeline_mode = #tpu.pipeline_mode<synchronous>, transform_indices = @transform_5, window_bounds = array<i64: 128, 128>}, {pipeline_mode = #tpu.pipeline_mode<synchronous>, transform_indices = @transform_6, window_bounds = array<i64: 1, 128>}, {transform_indices = @transform_7, window_bounds = array<i64: 512, 128>}]} {
    %c0 = arith.constant 0 : index
    %c0_0 = arith.constant 0 : index
    %0 = vector.load %arg1[%c0, %c0_0] : memref<512x128xbf16, #tpu.memory_space<vmem>>, vector<512x128xbf16>
    %c0_1 = arith.constant 0 : index
    %c0_2 = arith.constant 0 : index
    %1 = vector.load %arg2[%c0_1, %c0_2] : memref<128x128xbf16, #tpu.memory_space<vmem>>, vector<128x128xbf16>
    %cst = arith.constant dense<0.000000e+00> : vector<512x128xf32>
    %2 = tpu.matmul %0, %1, %cst {dimension_numbers = #tpu.dot_dimension_numbers<[1], [0], [0], [1], [0, 0, 1, 1], [], []>} : vector<512x128xbf16>, vector<128x128xbf16>, vector<512x128xf32> -> vector<512x128xf32>
    %c0_3 = arith.constant 0 : index
    %c0_4 = arith.constant 0 : index
    %3 = vector.load %arg3[%c0_3, %c0_4] : memref<1x128xf32, #tpu.memory_space<vmem>>, vector<1x128xf32>
    %4 = vector.broadcast %3 : vector<1x128xf32> to vector<512x128xf32>
    %5 = arith.addf %2, %4 : vector<512x128xf32>
    %cst_5 = arith.constant 0.000000e+00 : f32
    %6 = vector.broadcast %cst_5 : f32 to vector<512x128xf32>
    %7 = arith.maximumf %5, %6 : vector<512x128xf32>
    %8 = arith.truncf %7 : vector<512x128xf32> to vector<512x128xbf16>
    %c0_6 = arith.constant 0 : index
    %c0_7 = arith.constant 0 : index
    %9 = vector.load %arg4[%c0_6, %c0_7] : memref<128x128xbf16, #tpu.memory_space<vmem>>, vector<128x128xbf16>
    %cst_8 = arith.constant dense<0.000000e+00> : vector<512x128xf32>
    %10 = tpu.matmul %8, %9, %cst_8 {dimension_numbers = #tpu.dot_dimension_numbers<[1], [0], [0], [1], [0, 0, 1, 1], [], []>} : vector<512x128xbf16>, vector<128x128xbf16>, vector<512x128xf32> -> vector<512x128xf32>
    %c0_9 = arith.constant 0 : index
    %c0_10 = arith.constant 0 : index
    %11 = vector.load %arg5[%c0_9, %c0_10] : memref<1x128xf32, #tpu.memory_space<vmem>>, vector<1x128xf32>
    %12 = vector.broadcast %11 : vector<1x128xf32> to vector<512x128xf32>
    %13 = arith.addf %10, %12 : vector<512x128xf32>
    %cst_11 = arith.constant 0.000000e+00 : f32
    %14 = vector.broadcast %cst_11 : f32 to vector<512x128xf32>
    %15 = arith.maximumf %13, %14 : vector<512x128xf32>
    %16 = arith.truncf %15 : vector<512x128xf32> to vector<512x128xbf16>
    %c0_12 = arith.constant 0 : index
    %c0_13 = arith.constant 0 : index
    %17 = vector.load %arg6[%c0_12, %c0_13] : memref<128x128xbf16, #tpu.memory_space<vmem>>, vector<128x128xbf16>
    %cst_14 = arith.constant dense<0.000000e+00> : vector<512x128xf32>
    %18 = tpu.matmul %16, %17, %cst_14 {dimension_numbers = #tpu.dot_dimension_numbers<[1], [0], [0], [1], [0, 0, 1, 1], [], []>} : vector<512x128xbf16>, vector<128x128xbf16>, vector<512x128xf32> -> vector<512x128xf32>
    %c0_15 = arith.constant 0 : index
    %c0_16 = arith.constant 0 : index
    %19 = vector.load %arg7[%c0_15, %c0_16] : memref<1x128xf32, #tpu.memory_space<vmem>>, vector<1x128xf32>
    %20 = vector.broadcast %19 : vector<1x128xf32> to vector<512x128xf32>
    %21 = arith.addf %18, %20 : vector<512x128xf32>
    %cst_17 = arith.constant dense<0xFF800000> : vector<512xf32>
    %22 = vector.multi_reduction <maximumf>, %21, %cst_17 [1] : vector<512x128xf32> to vector<512xf32>
    %23 = vector.shape_cast %22 : vector<512xf32> to vector<512x1xf32>
    %24 = vector.broadcast %23 : vector<512x1xf32> to vector<512x128xf32>
    %25 = arith.subf %21, %24 : vector<512x128xf32>
    %26 = math.exp %25 : vector<512x128xf32>
    %cst_18 = arith.constant dense<0.000000e+00> : vector<512xf32>
    %27 = vector.multi_reduction <add>, %26, %cst_18 [1] : vector<512x128xf32> to vector<512xf32>
    %28 = vector.shape_cast %27 : vector<512xf32> to vector<512x1xf32>
    %29 = tpu.reciprocal %28 {approx = true} : vector<512x1xf32> -> vector<512x1xf32>
    %30 = vector.broadcast %29 : vector<512x1xf32> to vector<512x128xf32>
    %31 = arith.mulf %26, %30 : vector<512x128xf32>
    %c0_19 = arith.constant 0 : index
    %c0_20 = arith.constant 0 : index
    %32 = vector.load %arg8[%c0_19, %c0_20] : memref<512x128xf32, #tpu.memory_space<vmem>>, vector<512x128xf32>
    tpu.vector_store %arg8[%c0_19, %c0_20], %31 {strides = array<i32>} : memref<512x128xf32, #tpu.memory_space<vmem>>, vector<512x128xf32>,
    return
  }
  func.func @transform_0(%arg0: i32) -> (i32, i32) {
    %c0_i32 = arith.constant 0 : i32
    %c0_i32_0 = arith.constant 0 : i32
    return %arg0, %c0_i32 : i32, i32
  }
  func.func @transform_1(%arg0: i32) -> (i32, i32) {
    %c0_i32 = arith.constant 0 : i32
    %c0_i32_0 = arith.constant 0 : i32
    %c0_i32_1 = arith.constant 0 : i32
    return %c0_i32, %c0_i32_0 : i32, i32
  }
  func.func @transform_2(%arg0: i32) -> (i32, i32) {
    %c0_i32 = arith.constant 0 : i32
    %c0_i32_0 = arith.constant 0 : i32
    %c0_i32_1 = arith.constant 0 : i32
    return %c0_i32, %c0_i32_0 : i32, i32
  }
  func.func @transform_3(%arg0: i32) -> (i32, i32) {
    %c0_i32 = arith.constant 0 : i32
    %c0_i32_0 = arith.constant 0 : i32
    %c0_i32_1 = arith.constant 0 : i32
    return %c0_i32, %c0_i32_0 : i32, i32
  }
  func.func @transform_4(%arg0: i32) -> (i32, i32) {
    %c0_i32 = arith.constant 0 : i32
    %c0_i32_0 = arith.constant 0 : i32
    %c0_i32_1 = arith.constant 0 : i32
    return %c0_i32, %c0_i32_0 : i32, i32
  }
  func.func @transform_5(%arg0: i32) -> (i32, i32) {
    %c0_i32 = arith.constant 0 : i32
    %c0_i32_0 = arith.constant 0 : i32
    %c0_i32_1 = arith.constant 0 : i32
    return %c0_i32, %c0_i32_0 : i32, i32
  }
  func.func @transform_6(%arg0: i32) -> (i32, i32) {
    %c0_i32 = arith.constant 0 : i32
    %c0_i32_0 = arith.constant 0 : i32
    %c0_i32_1 = arith.constant 0 : i32
    return %c0_i32, %c0_i32_0 : i32, i32
  }
  func.func @transform_7(%arg0: i32) -> (i32, i32) {
    %c0_i32 = arith.constant 0 : i32
    %c0_i32_0 = arith.constant 0 : i32
    return %arg0, %c0_i32 : i32, i32
  }
}

</mosaic_0001>

<bundles_post_ra>
// kernel: actor_forward.1
= control target key start
LH: loop header
LB: loop body
LE: loop exit
PB: predicated region body
PF: predicated region fallthrough
CT: control target
= control target key end

     0   :  { %s3321_s24 = smov 0   ;;  %s4269_s0 = inlined_call_operand.vmem [shape: bf16[1024,128], index: 0, kind: input, shape index: {}]   ;;  %s4270_s1 = inlined_call_operand.vmem [shape: bf16[128,128], index: 1, kind: input, shape index: {}]   ;;  %s4271_s2 = inlined_call_operand.vmem [shape: f32[1,128], index: 2, kind: input, shape index: {}]   ;;  %s4272_s3 = inlined_call_operand.vmem [shape: bf16[128,128], index: 3, kind: input, shape index: {}]   ;;  %s4273_s4 = inlined_call_operand.vmem [shape: f32[1,128], index: 4, kind: input, shape index: {}]   ;;  %s4274_s5 = inlined_call_operand.vmem [shape: bf16[128,128], index: 5, kind: input, shape index: {}]   ;;  %s4275_s6 = inlined_call_operand.vmem [shape: f32[1,128], index: 6, kind: input, shape index: {}]   ;;  %s4276_s7 = inlined_call_operand.vmem [shape: f32[1024,128], index: 7, kind: output, shape index: {}]  }
   0x1 LB: > { %s2507_s25 = sadd.s32 4294967295, %s3279_s24   ;;  %p2511_p0 = scmp.ge.s32.totalorder %s3279_s24, 1  ;;  %s3279_s24 = sphi %s3321_s24, %s17_s24  }
   0x2   : > { %p238_p1 = scmp.lt.s32.totalorder %s3279_s24, 3 }
   0x4   : > { %p239_p2 = pnand %p2511_p0, %p238_p1 }
   0x6   : > { %242 = sbr.rel (%p239_p2) target bundleno = 1147 (0x47b), region = 48 }
   0xd   : > { %v2961_v0 = vld [vmem:[%s4270_s1] sm:$0xff]   ;;  %s2512_s28 = sshll.u32 %s2507_s25, 6  ;;  %v2962_v1 = vld [vmem:[%s4270_s1 + $0x8] sm:$0xff]   ;;  %v2963_v2 = vld [vmem:[%s4270_s1 + $0x10] sm:$0xff]  }
   0xe   : > { %p271_p3 = scmp.lt.s32.totalorder %s2512_s28, 127  ;;  %2697 = vmatprep.subr.bf16.mxu0 %v2961_v0  ;;  %2937 = vmatprep.subr.bf16.mxu1 %v2961_v0  ;;  %v2964_v3 = vld [vmem:[%s4270_s1 + $0x18] sm:$0xff]   ;;  %v2965_v5 = vld [vmem:[%s4270_s1 + $0x20] sm:$0xff]   ;;  %v2966_v6 = vld [vmem:[%s4270_s1 + $0x28] sm:$0xff]  }
   0xf   : > { %2698 = vmatpush3.bf16.msra.mxu0 %v2961_v0  ;;  %2945 = vmatpush3.bf16.msra.mxu1 %v2961_v0  ;;  %v2967_v7 = vld [vmem:[%s4270_s1 + $0x30] sm:$0xff]   ;;  %v2968_v8 = vld [vmem:[%s4270_s1 + $0x38] sm:$0xff]   ;;  %v3001_v18 = vld [vmem:[%s4272_s3] sm:$0xff]  }
  0x10   : > { %s4350_s28 = smov (!%p271_p3, %s2512_s28), 127  ;;  %2699 = vmatprep.subr.bf16.mxu0 %v2962_v1  ;;  %2938 = vmatprep.subr.bf16.mxu1 %v2962_v1  ;;  %v3002_v19 = vld [vmem:[%s4272_s3 + $0x8] sm:$0xff]   ;;  %v3003_v24 = vld [vmem:[%s4272_s3 + $0x10] sm:$0xff]   ;;  %v3004_v25 = vld [vmem:[%s4272_s3 + $0x18] sm:$0xff]  }
  0x11   : > { %s2513_s10 = sshll.u32 %s4350_s28, 2  ;;  %v3005_v30 = vld [vmem:[%s4272_s3 + $0x20] sm:$0xff]   ;;  %v3006_v31 = vld [vmem:[%s4272_s3 + $0x28] sm:$0xff]   ;;  %v3007_v36 = vld [vmem:[%s4272_s3 + $0x30] sm:$0xff]   ;;  %s2515_s21 = sshll.u32 %s4350_s28, 3 }
  0x12   : > { %s3344_s13 = scalar_lea.vmem %s4269_s0, %s2513_s10  ;;  %v3008_v47 = vld [vmem:[%s4272_s3 + $0x38] sm:$0xff]   ;;  %v3420_v48 = vld [vmem:[%s4271_s2] ss:$0 sm:$0xff]  ;;  %s4136_s23 = scalar_lea.vmem %s4276_s7, %s2515_s21 }
  0x13   : > { %2700 = vmatpush3.bf16.msra.mxu0 %v2962_v1  ;;  %2946 = vmatpush3.bf16.msra.mxu1 %v2962_v1  ;;  %v2969_v4 = vld [vmem:[%s3344_s13] sm:$0xff]   ;;  %v2970_v10 = vld [vmem:[%s3344_s13 + $0x8] sm:$0xff]   ;;  %v2971_v11 = vld [vmem:[%s3344_s13 + $0x10] sm:$0xff]  }
  0x14   : > { %2701 = vmatprep.subr.bf16.mxu0 %v2963_v2  ;;  %2939 = vmatprep.subr.bf16.mxu1 %v2963_v2  ;;  %v2985_v9 = vld [vmem:[%s3344_s13 + $0x80] sm:$0xff]   ;;  %v2986_v12 = vld [vmem:[%s3344_s13 + $0x88] sm:$0xff]   ;;  %v2987_v13 = vld [vmem:[%s3344_s13 + $0x90] sm:$0xff]  }
  0x15   : > { %2713 = vmatprep.mubr.bf16.mxu0 %v2969_v4  ;;  %2745 = vmatprep.mubr.bf16.mxu1 %v2985_v9  ;;  %v2972_v14 = vld [vmem:[%s3344_s13 + $0x18] sm:$0xff]   ;;  %v2973_v15 = vld [vmem:[%s3344_s13 + $0x20] sm:$0xff]   ;;  %v2974_v20 = vld [vmem:[%s3344_s13 + $0x28] sm:$0xff]  }
  0x16   : > { %v2988_v16 = vld [vmem:[%s3344_s13 + $0x98] sm:$0xff]   ;;  %v2989_v17 = vld [vmem:[%s3344_s13 + $0xa0] sm:$0xff]   ;;  %v2990_v21 = vld [vmem:[%s3344_s13 + $0xa8] sm:$0xff]  }
  0x17   : > { %2702 = vmatpush3.bf16.msra.mxu0 %v2963_v2  ;;  %2947 = vmatpush3.bf16.msra.mxu1 %v2963_v2  ;;  %v2975_v22 = vld [vmem:[%s3344_s13 + $0x30] sm:$0xff]   ;;  %v2976_v26 = vld [vmem:[%s3344_s13 + $0x38] sm:$0xff]   ;;  %v2977_v28 = vld [vmem:[%s3344_s13 + $0x40] sm:$0xff]  }
  0x18   : > { %2703 = vmatprep.subr.bf16.mxu0 %v2964_v3  ;;  %2940 = vmatprep.subr.bf16.mxu1 %v2964_v3  ;;  %v2991_v23 = vld [vmem:[%s3344_s13 + $0xb0] sm:$0xff]   ;;  %v2992_v27 = vld [vmem:[%s3344_s13 + $0xb8] sm:$0xff]   ;;  %v2993_v29 = vld [vmem:[%s3344_s13 + $0xc0] sm:$0xff]  }
  0x19   : > { %v2978_v32 = vld [vmem:[%s3344_s13 + $0x48] sm:$0xff]   ;;  %v2979_v34 = vld [vmem:[%s3344_s13 + $0x50] sm:$0xff]   ;;  %v2980_v37 = vld [vmem:[%s3344_s13 + $0x58] sm:$0xff]  }
  0x1a   : > { %v2994_v33 = vld [vmem:[%s3344_s13 + $0xc8] sm:$0xff]   ;;  %v2995_v35 = vld [vmem:[%s3344_s13 + $0xd0] sm:$0xff]   ;;  %v2996_v38 = vld [vmem:[%s3344_s13 + $0xd8] sm:$0xff]  }
  0x1b   : > { %2704 = vmatpush3.bf16.msra.mxu0 %v2964_v3  ;;  %2948 = vmatpush3.bf16.msra.mxu1 %v2964_v3  ;;  %v2981_v39 = vld [vmem:[%s3344_s13 + $0x60] sm:$0xff]   ;;  %v2982_v41 = vld [vmem:[%s3344_s13 + $0x68] sm:$0xff]   ;;  %v2983_v43 = vld [vmem:[%s3344_s13 + $0x70] sm:$0xff]  }
  0x1c   : > { %2705 = vmatprep.subr.bf16.mxu0 %v2965_v5  ;;  %2941 = vmatprep.subr.bf16.mxu1 %v2965_v5  ;;  %v2997_v40 = vld [vmem:[%s3344_s13 + $0xe0] sm:$0xff]   ;;  %v2998_v42 = vld [vmem:[%s3344_s13 + $0xe8] sm:$0xff]   ;;  %v2999_v44 = vld [vmem:[%s3344_s13 + $0xf0] sm:$0xff]  }
  0x1d   : > { %v2984_v45 = vld [vmem:[%s3344_s13 + $0x78] sm:$0xff]   ;;  %v3009_v0 = vld [vmem:[%s4274_s5] sm:$0xff]   ;;  %v3010_v1 = vld [vmem:[%s4274_s5 + $0x8] sm:$0xff]  }
  0x1e   : > { %v3000_v46 = vld [vmem:[%s3344_s13 + $0xf8] sm:$0xff]  }
  0x1f   : > { %2706 = vmatpush3.bf16.msra.mxu0 %v2965_v5  ;;  %2949 = vmatpush3.bf16.msra.mxu1 %v2965_v5 }
  0x20   : > { %2707 = vmatprep.subr.bf16.mxu0 %v2966_v6  ;;  %2942 = vmatprep.subr.bf16.mxu1 %v2966_v6 }
  0x23   : > { %2708 = vmatpush3.bf16.msra.mxu0 %v2966_v6  ;;  %2950 = vmatpush3.bf16.msra.mxu1 %v2966_v6 }
  0x24   : > { %2709 = vmatprep.subr.bf16.mxu0 %v2967_v7  ;;  %2943 = vmatprep.subr.bf16.mxu1 %v2967_v7 }
  0x27   : > { %2710 = vmatpush3.bf16.msra.mxu0 %v2967_v7  ;;  %2951 = vmatpush3.bf16.msra.mxu1 %v2967_v7 }
  0x28   : > { %2711 = vmatprep.subr.bf16.mxu0 %v2968_v8  ;;  %2944 = vmatprep.subr.bf16.mxu1 %v2968_v8 }
  0x2b   : > { %2712 = vmatpush3.bf16.msra.mxu0 %v2968_v8  ;;  %2952 = vmatpush3.bf16.msra.mxu1 %v2968_v8 }
  0x2c   : > { %2777 = vmatprep.subr.bf16.mxu1 %v3001_v18  ;;  %2857 = vmatprep.subr.bf16.mxu0 %v3009_v0 }
  0x2e   : > { %2714 = vmatmul.mubr.bf16.vlgmr.msra.gmra.mrb[0].mxu0 %v2970_v10  ;;  %2746 = vmatmul.mubr.bf16.vlgmr.msra.gmra.mrb[0].mxu1 %v2986_v12 }
  0x2f   : > { %2717 = vmatprep.mubr.bf16.mxu0 %v2971_v11  ;;  %2749 = vmatprep.mubr.bf16.mxu1 %v2987_v13  ;;  %v3011_v13 = vld [vmem:[%s4274_s5 + $0x10] sm:$0xff]  }
  0x30   : > { %2778 = vmatpush3.bf16.msra.mxu1 %v3001_v18  ;;  %2858 = vmatpush3.bf16.msra.mxu0 %v3009_v0 }
  0x31   : > { %2779 = vmatprep.subr.bf16.mxu1 %v3002_v19  ;;  %2859 = vmatprep.subr.bf16.mxu0 %v3010_v1 }
  0x34   : > { %2780 = vmatpush3.bf16.msra.mxu1 %v3002_v19  ;;  %2860 = vmatpush3.bf16.msra.mxu0 %v3010_v1 }
  0x35   : > { %2781 = vmatprep.subr.bf16.mxu1 %v3003_v24  ;;  %2861 = vmatprep.subr.bf16.mxu0 %v3011_v13 }
  0x36   : > { %2718 = vmatmul.mubr.bf16.gmra.mrb[4].mxu0 %v2972_v14  ;;  %2750 = vmatmul.mubr.bf16.gmra.mrb[4].mxu1 %v2988_v16 }
  0x37   : > { %2721 = vmatprep.mubr.bf16.mxu0 %v2973_v15  ;;  %2753 = vmatprep.mubr.bf16.mxu1 %v2989_v17 }
  0x38   : > { %2782 = vmatpush3.bf16.msra.mxu1 %v3003_v24  ;;  %2862 = vmatpush3.bf16.msra.mxu0 %v3011_v13 }
  0x39   : > { %2783 = vmatprep.subr.bf16.mxu1 %v3004_v25 }
  0x3c   : > { %2784 = vmatpush3.bf16.msra.mxu1 %v3004_v25 }
  0x3d   : > { %2785 = vmatprep.subr.bf16.mxu1 %v3005_v30 }
  0x3e   : > { %2722 = vmatmul.mubr.bf16.gmra.mrb[8].mxu0 %v2974_v20  ;;  %2754 = vmatmul.mubr.bf16.gmra.mrb[8].mxu1 %v2990_v21 }
  0x3f   : > { %2725 = vmatprep.mubr.bf16.mxu0 %v2975_v22  ;;  %2757 = vmatprep.mubr.bf16.mxu1 %v2991_v23 }
  0x40   : > { %2786 = vmatpush3.bf16.msra.mxu1 %v3005_v30 }
  0x41   : > { %2787 = vmatprep.subr.bf16.mxu1 %v3006_v31 }
  0x44   : > { %2788 = vmatpush3.bf16.msra.mxu1 %v3006_v31  ;;  %v3012_v31 = vld [vmem:[%s4274_s5 + $0x18] sm:$0xff]  }
  0x45   : > { %2789 = vmatprep.subr.bf16.mxu1 %v3007_v36  ;;  %2863 = vmatprep.subr.bf16.mxu0 %v3012_v31 }
  0x46   : > { %2726 = vmatmul.mubr.bf16.gmra.mrb[12].mxu0 %v2976_v26  ;;  %2758 = vmatmul.mubr.bf16.gmra.mrb[12].mxu1 %v2992_v27 }
  0x47   : > { %2729 = vmatprep.mubr.bf16.mxu0 %v2977_v28  ;;  %2761 = vmatprep.mubr.bf16.mxu1 %v2993_v29 }
  0x48   : > { %2790 = vmatpush3.bf16.msra.mxu1 %v3007_v36  ;;  %2864 = vmatpush3.bf16.msra.mxu0 %v3012_v31 }
  0x49   : > { %2791 = vmatprep.subr.bf16.mxu1 %v3008_v47 }
  0x4c   : > { %2792 = vmatpush3.bf16.msra.mxu1 %v3008_v47 }
  0x4e   : > { %2730 = vmatmul.mubr.bf16.gmra.mrb[16].mxu0 %v2978_v32  ;;  %2762 = vmatmul.mubr.bf16.gmra.mrb[16].mxu1 %v2994_v33 }
  0x4f   : > { %2733 = vmatprep.mubr.bf16.mxu0 %v2979_v34  ;;  %2765 = vmatprep.mubr.bf16.mxu1 %v2995_v35 }
  0x56   : > { %2734 = vmatmul.mubr.bf16.gmra.mrb[20].mxu0 %v2980_v37  ;;  %2766 = vmatmul.mubr.bf16.gmra.mrb[20].mxu1 %v2996_v38 }
  0x57   : > { %2737 = vmatprep.mubr.bf16.mxu0 %v2981_v39  ;;  %2769 = vmatprep.mubr.bf16.mxu1 %v2997_v40 }
  0x5e   : > { %2738 = vmatmul.mubr.bf16.gmra.mrb[24].mxu0 %v2982_v41  ;;  %2770 = vmatmul.mubr.bf16.gmra.mrb[24].mxu1 %v2998_v42 }
  0x5f   : > { %2741 = vmatprep.mubr.bf16.mxu0 %v2983_v43  ;;  %2773 = vmatprep.mubr.bf16.mxu1 %v2999_v44  ;;  %v3013_v43 = vld [vmem:[%s4274_s5 + $0x20] sm:$0xff]  }
  0x60   : > { %2865 = vmatprep.subr.bf16.mxu0 %v3013_v43 }
  0x61   : > { %2866 = vmatpush3.bf16.msra.mxu0 %v3013_v43 }
  0x66   : > { %2742 = vmatmul.mubr.bf16.gmra.mrb[28].mxu0 %v2984_v45  ;;  %2774 = vmatmul.mubr.bf16.gmra.mrb[28].mxu1 %v3000_v46 }
 0x101   : > { %v2715_v49 = vpop.f32.mrb[0].mxu0  ;;  %v2747_v50 = vpop.f32.mrb[0].mxu1 }
 0x102   : > { %v653_v51 = vadd.f32 %v2715_v49, %v3420_v48  ;;  %v644_v52 = vpop.f32.mrb[1].mxu0  ;;  %v781_v53 = vadd.f32 %v2747_v50, %v3420_v48  ;;  %v772_v54 = vpop.f32.mrb[1].mxu1 }
 0x103   : > { %v645_v55 = vadd.f32 %v3420_v48, %v644_v52  ;;  %v2716_v56 = vpop.f32.mrb[2].mxu0  ;;  %v773_v57 = vadd.f32 %v3420_v48, %v772_v54  ;;  %v2748_v58 = vpop.f32.mrb[2].mxu1 }
 0x104   : > { %v656_v59 = vadd.f32 %v2716_v56, %v3420_v48  ;;  %v647_v60 = vpop.f32.mrb[3].mxu0  ;;  %v933_v61 = vmax.f32 %v781_v53, 0.0  ;;  %v784_v62 = vadd.f32 %v2748_v58, %v3420_v48  ;;  %v775_v63 = vpop.f32.mrb[3].mxu1  ;;  %v901_v5 = vmax.f32 %v653_v51, 0.0 }
 0x105   : > { %v648_v2 = vadd.f32 %v3420_v48, %v647_v60  ;;  %v931_v3 = vmax.f32 %v773_v57, 0.0  ;;  %v776_v4 = vadd.f32 %v3420_v48, %v775_v63  ;;  %v899_v8 = vmax.f32 %v645_v55, 0.0 }
 0x106   : > { %v902_v6 = vmax.f32 %v656_v59, 0.0  ;;  %v934_v7 = vmax.f32 %v784_v62, 0.0  ;;  %v3014_v62 = vld [vmem:[%s4274_s5 + $0x28] sm:$0xff]  }
 0x107   : > { %v900_v9 = vmax.f32 %v648_v2, 0.0  ;;  %v932_v10 = vmax.f32 %v776_v4, 0.0  ;;  %2867 = vmatprep.subr.bf16.mxu0 %v3014_v62 }
 0x108   : > { %v964_v11 = vpack.c.bf16 %v902_v6, %v901_v5  ;;  %v3436_v12 = vpack.c.bf16 %v934_v7, %v933_v61  ;;  %2868 = vmatpush3.bf16.msra.mxu0 %v3014_v62 }
 0x109   : > { %v963_v14 = vpack.c.bf16 %v900_v9, %v899_v8  ;;  %v2719_v15 = vpop.f32.mrb[4].mxu0  ;;  %v3441_v16 = vpack.c.bf16 %v932_v10, %v931_v3  ;;  %v2751_v17 = vpop.f32.mrb[4].mxu1  ;;  %v3015_v10 = vld [vmem:[%s4274_s5 + $0x30] sm:$0xff]  }
 0x10a   : > { %v669_v18 = vadd.f32 %v2719_v15, %v3420_v48  ;;  %v660_v19 = vpop.f32.mrb[5].mxu0  ;;  %v797_v20 = vadd.f32 %v2751_v17, %v3420_v48  ;;  %v788_v21 = vpop.f32.mrb[5].mxu1  ;;  %2869 = vmatprep.subr.bf16.mxu0 %v3015_v10 }
 0x10b   : > { %v661_v22 = vadd.f32 %v3420_v48, %v660_v19  ;;  %v2720_v23 = vpop.f32.mrb[6].mxu0  ;;  %2793 = vmatprep.mubr.bf16.mxu1 %v963_v14  ;;  %v789_v24 = vadd.f32 %v3420_v48, %v788_v21  ;;  %v2752_v25 = vpop.f32.mrb[6].mxu1 }
 0x10c   : > { %v672_v26 = vadd.f32 %v2720_v23, %v3420_v48  ;;  %v663_v27 = vpop.f32.mrb[7].mxu0  ;;  %2794 = vmatmul.mubr.bf16.vlgmr.msra.gmra.mrb[32].mxu1 %v964_v11  ;;  %v937_v28 = vmax.f32 %v797_v20, 0.0  ;;  %v800_v29 = vadd.f32 %v2752_v25, %v3420_v48  ;;  %v791_v30 = vpop.f32.mrb[7].mxu1  ;;  %v905_v35 = vmax.f32 %v669_v18, 0.0  ;;  %2870 = vmatpush3.bf16.msra.mxu0 %v3015_v10 }
 0x10d   : > { %v664_v32 = vadd.f32 %v3420_v48, %v663_v27  ;;  %v935_v33 = vmax.f32 %v789_v24, 0.0  ;;  %v792_v34 = vadd.f32 %v3420_v48, %v791_v30  ;;  %v903_v38 = vmax.f32 %v661_v22, 0.0 }
 0x10e   : > { %v906_v36 = vmax.f32 %v672_v26, 0.0  ;;  %v938_v37 = vmax.f32 %v800_v29, 0.0 }
 0x10f   : > { %v904_v39 = vmax.f32 %v664_v32, 0.0  ;;  %v936_v40 = vmax.f32 %v792_v34, 0.0 }
 0x110   : > { %v966_v41 = vpack.c.bf16 %v906_v36, %v905_v35  ;;  %v3454_v42 = vpack.c.bf16 %v938_v37, %v937_v28 }
 0x111   : > { %v965_v44 = vpack.c.bf16 %v904_v39, %v903_v38  ;;  %v2723_v45 = vpop.f32.mrb[8].mxu0  ;;  %v3459_v46 = vpack.c.bf16 %v936_v40, %v935_v33  ;;  %v2755_v47 = vpop.f32.mrb[8].mxu1 }
 0x112   : > { %v685_v49 = vadd.f32 %v2723_v45, %v3420_v48  ;;  %v676_v50 = vpop.f32.mrb[9].mxu0  ;;  %v813_v51 = vadd.f32 %v2755_v47, %v3420_v48  ;;  %v804_v52 = vpop.f32.mrb[9].mxu1 }
 0x113   : > { %v677_v53 = vadd.f32 %v3420_v48, %v676_v50  ;;  %v2724_v54 = vpop.f32.mrb[10].mxu0  ;;  %2797 = vmatprep.mubr.bf16.mxu1 %v965_v44  ;;  %v805_v55 = vadd.f32 %v3420_v48, %v804_v52  ;;  %v2756_v56 = vpop.f32.mrb[10].mxu1 }
 0x114   : > { %v688_v57 = vadd.f32 %v2724_v54, %v3420_v48  ;;  %v679_v58 = vpop.f32.mrb[11].mxu0  ;;  %2798 = vmatmul.mubr.bf16.gmra.mrb[36].mxu1 %v966_v41  ;;  %v941_v59 = vmax.f32 %v813_v51, 0.0  ;;  %v816_v60 = vadd.f32 %v2756_v56, %v3420_v48  ;;  %v807_v61 = vpop.f32.mrb[11].mxu1  ;;  %v909_v2 = vmax.f32 %v685_v49, 0.0 }
 0x115   : > { %v680_v63 = vadd.f32 %v3420_v48, %v679_v58  ;;  %v939_v0 = vmax.f32 %v805_v55, 0.0  ;;  %v808_v1 = vadd.f32 %v3420_v48, %v807_v61  ;;  %v907_v5 = vmax.f32 %v677_v53, 0.0 }
 0x116   : > { %v910_v3 = vmax.f32 %v688_v57, 0.0  ;;  %v942_v4 = vmax.f32 %v816_v60, 0.0 }
 0x117   : > { %v908_v6 = vmax.f32 %v680_v63, 0.0  ;;  %v940_v7 = vmax.f32 %v808_v1, 0.0 }
 0x118   : > { %v968_v8 = vpack.c.bf16 %v910_v3, %v909_v2  ;;  %v3472_v9 = vpack.c.bf16 %v942_v4, %v941_v59 }
 0x119   : > { %v967_v11 = vpack.c.bf16 %v908_v6, %v907_v5  ;;  %v2727_v13 = vpop.f32.mrb[12].mxu0  ;;  %v3477_v14 = vpack.c.bf16 %v940_v7, %v939_v0  ;;  %v2759_v15 = vpop.f32.mrb[12].mxu1 }
 0x11a   : > { %v701_v17 = vadd.f32 %v2727_v13, %v3420_v48  ;;  %v692_v18 = vpop.f32.mrb[13].mxu0  ;;  %v829_v19 = vadd.f32 %v2759_v15, %v3420_v48  ;;  %v820_v20 = vpop.f32.mrb[13].mxu1 }
 0x11b   : > { %v693_v21 = vadd.f32 %v3420_v48, %v692_v18  ;;  %v2728_v22 = vpop.f32.mrb[14].mxu0  ;;  %2801 = vmatprep.mubr.bf16.mxu1 %v967_v11  ;;  %v821_v23 = vadd.f32 %v3420_v48, %v820_v20  ;;  %v2760_v24 = vpop.f32.mrb[14].mxu1 }
 0x11c   : > { %v704_v25 = vadd.f32 %v2728_v22, %v3420_v48  ;;  %v695_v26 = vpop.f32.mrb[15].mxu0  ;;  %2802 = vmatmul.mubr.bf16.gmra.mrb[40].mxu1 %v968_v8  ;;  %v945_v27 = vmax.f32 %v829_v19, 0.0  ;;  %v832_v28 = vadd.f32 %v2760_v24, %v3420_v48  ;;  %v823_v29 = vpop.f32.mrb[15].mxu1  ;;  %v913_v33 = vmax.f32 %v701_v17, 0.0 }
 0x11d   : > { %v696_v30 = vadd.f32 %v3420_v48, %v695_v26  ;;  %v943_v31 = vmax.f32 %v821_v23, 0.0  ;;  %v824_v32 = vadd.f32 %v3420_v48, %v823_v29  ;;  %v911_v36 = vmax.f32 %v693_v21, 0.0 }
 0x11e   : > { %v914_v34 = vmax.f32 %v704_v25, 0.0  ;;  %v946_v35 = vmax.f32 %v832_v28, 0.0 }
 0x11f   : > { %v912_v37 = vmax.f32 %v696_v30, 0.0  ;;  %v944_v38 = vmax.f32 %v824_v32, 0.0 }
 0x120   : > { %v970_v39 = vpack.c.bf16 %v914_v34, %v913_v33  ;;  %v3487_v40 = vpack.c.bf16 %v946_v35, %v945_v27 }
 0x121   : > { %v969_v41 = vpack.c.bf16 %v912_v37, %v911_v36  ;;  %v2731_v43 = vpop.f32.mrb[16].mxu0  ;;  %v3489_v44 = vpack.c.bf16 %v944_v38, %v943_v31  ;;  %v2763_v45 = vpop.f32.mrb[16].mxu1 }
 0x122   : > { %v717_v47 = vadd.f32 %v2731_v43, %v3420_v48  ;;  %v708_v49 = vpop.f32.mrb[17].mxu0  ;;  %v845_v50 = vadd.f32 %v2763_v45, %v3420_v48  ;;  %v836_v51 = vpop.f32.mrb[17].mxu1 }
 0x123   : > { %v709_v52 = vadd.f32 %v3420_v48, %v708_v49  ;;  %v2732_v53 = vpop.f32.mrb[18].mxu0  ;;  %2805 = vmatprep.mubr.bf16.mxu1 %v969_v41  ;;  %v837_v54 = vadd.f32 %v3420_v48, %v836_v51  ;;  %v2764_v55 = vpop.f32.mrb[18].mxu1 }
 0x124   : > { %v720_v56 = vadd.f32 %v2732_v53, %v3420_v48  ;;  %v711_v57 = vpop.f32.mrb[19].mxu0  ;;  %2806 = vmatmul.mubr.bf16.gmra.mrb[44].mxu1 %v970_v39  ;;  %v949_v58 = vmax.f32 %v845_v50, 0.0  ;;  %v848_v59 = vadd.f32 %v2764_v55, %v3420_v48  ;;  %v839_v60 = vpop.f32.mrb[19].mxu1  ;;  %v917_v0 = vmax.f32 %v717_v47, 0.0 }
 0x125   : > { %v712_v61 = vadd.f32 %v3420_v48, %v711_v57  ;;  %v947_v62 = vmax.f32 %v837_v54, 0.0  ;;  %v840_v63 = vadd.f32 %v3420_v48, %v839_v60  ;;  %v915_v3 = vmax.f32 %v709_v52, 0.0 }
 0x126   : > { %v918_v1 = vmax.f32 %v720_v56, 0.0  ;;  %v950_v2 = vmax.f32 %v848_v59, 0.0 }
 0x127   : > { %v916_v4 = vmax.f32 %v712_v61, 0.0  ;;  %v948_v5 = vmax.f32 %v840_v63, 0.0 }
 0x128   : > { %v972_v6 = vpack.c.bf16 %v918_v1, %v917_v0  ;;  %v3499_v7 = vpack.c.bf16 %v950_v2, %v949_v58 }
 0x129   : > { %v971_v8 = vpack.c.bf16 %v916_v4, %v915_v3  ;;  %v2735_v10 = vpop.f32.mrb[20].mxu0  ;;  %v3501_v11 = vpack.c.bf16 %v948_v5, %v947_v62  ;;  %v2767_v13 = vpop.f32.mrb[20].mxu1 }
 0x12a   : > { %v733_v15 = vadd.f32 %v2735_v10, %v3420_v48  ;;  %v724_v17 = vpop.f32.mrb[21].mxu0  ;;  %v861_v18 = vadd.f32 %v2767_v13, %v3420_v48  ;;  %v852_v19 = vpop.f32.mrb[21].mxu1 }
 0x12b   : > { %v725_v20 = vadd.f32 %v3420_v48, %v724_v17  ;;  %v2736_v21 = vpop.f32.mrb[22].mxu0  ;;  %2809 = vmatprep.mubr.bf16.mxu1 %v971_v8  ;;  %v853_v22 = vadd.f32 %v3420_v48, %v852_v19  ;;  %v2768_v23 = vpop.f32.mrb[22].mxu1 }
 0x12c   : > { %v736_v24 = vadd.f32 %v2736_v21, %v3420_v48  ;;  %v727_v25 = vpop.f32.mrb[23].mxu0  ;;  %2810 = vmatmul.mubr.bf16.gmra.mrb[48].mxu1 %v972_v6  ;;  %v953_v26 = vmax.f32 %v861_v18, 0.0  ;;  %v864_v27 = vadd.f32 %v2768_v23, %v3420_v48  ;;  %v855_v28 = vpop.f32.mrb[23].mxu1  ;;  %v921_v32 = vmax.f32 %v733_v15, 0.0 }
 0x12d   : > { %v728_v29 = vadd.f32 %v3420_v48, %v727_v25  ;;  %v951_v30 = vmax.f32 %v853_v22, 0.0  ;;  %v856_v31 = vadd.f32 %v3420_v48, %v855_v28  ;;  %v919_v35 = vmax.f32 %v725_v20, 0.0 }
 0x12e   : > { %v922_v33 = vmax.f32 %v736_v24, 0.0  ;;  %v954_v34 = vmax.f32 %v864_v27, 0.0 }
 0x12f   : > { %v920_v36 = vmax.f32 %v728_v29, 0.0  ;;  %v952_v37 = vmax.f32 %v856_v31, 0.0 }
 0x130   : > { %v974_v38 = vpack.c.bf16 %v922_v33, %v921_v32  ;;  %v3511_v39 = vpack.c.bf16 %v954_v34, %v953_v26 }
 0x131   : > { %v973_v41 = vpack.c.bf16 %v920_v36, %v919_v35  ;;  %v2739_v43 = vpop.f32.mrb[24].mxu0  ;;  %v3513_v45 = vpack.c.bf16 %v952_v37, %v951_v30  ;;  %v2771_v47 = vpop.f32.mrb[24].mxu1 }
 0x132   : > { %v749_v49 = vadd.f32 %v2739_v43, %v3420_v48  ;;  %v740_v50 = vpop.f32.mrb[25].mxu0  ;;  %v877_v51 = vadd.f32 %v2771_v47, %v3420_v48  ;;  %v868_v52 = vpop.f32.mrb[25].mxu1 }
 0x133   : > { %v741_v53 = vadd.f32 %v3420_v48, %v740_v50  ;;  %v2740_v54 = vpop.f32.mrb[26].mxu0  ;;  %2813 = vmatprep.mubr.bf16.mxu1 %v973_v41  ;;  %v869_v55 = vadd.f32 %v3420_v48, %v868_v52  ;;  %v2772_v56 = vpop.f32.mrb[26].mxu1 }
 0x134   : > { %v752_v57 = vadd.f32 %v2740_v54, %v3420_v48  ;;  %v743_v58 = vpop.f32.mrb[27].mxu0  ;;  %2814 = vmatmul.mubr.bf16.gmra.mrb[52].mxu1 %v974_v38  ;;  %v957_v59 = vmax.f32 %v877_v51, 0.0  ;;  %v880_v60 = vadd.f32 %v2772_v56, %v3420_v48  ;;  %v871_v61 = vpop.f32.mrb[27].mxu1  ;;  %v925_v1 = vmax.f32 %v749_v49, 0.0 }
 0x135   : > { %v744_v62 = vadd.f32 %v3420_v48, %v743_v58  ;;  %v955_v63 = vmax.f32 %v869_v55, 0.0  ;;  %v872_v0 = vadd.f32 %v3420_v48, %v871_v61  ;;  %v923_v4 = vmax.f32 %v741_v53, 0.0 }
 0x136   : > { %v926_v2 = vmax.f32 %v752_v57, 0.0  ;;  %v958_v3 = vmax.f32 %v880_v60, 0.0 }
 0x137   : > { %v924_v5 = vmax.f32 %v744_v62, 0.0  ;;  %v956_v6 = vmax.f32 %v872_v0, 0.0 }
 0x138   : > { %v976_v8 = vpack.c.bf16 %v926_v2, %v925_v1  ;;  %v992_v10 = vpack.c.bf16 %v958_v3, %v957_v59 }
 0x139   : > { %v975_v13 = vpack.c.bf16 %v924_v5, %v923_v4  ;;  %v2743_v15 = vpop.f32.mrb[28].mxu0  ;;  %v991_v17 = vpack.c.bf16 %v956_v6, %v955_v63  ;;  %v2775_v18 = vpop.f32.mrb[28].mxu1 }
 0x13a   : > { %v765_v19 = vadd.f32 %v2743_v15, %v3420_v48  ;;  %v756_v20 = vpop.f32.mrb[29].mxu0  ;;  %v893_v21 = vadd.f32 %v2775_v18, %v3420_v48  ;;  %v884_v22 = vpop.f32.mrb[29].mxu1 }
 0x13b   : > { %v757_v23 = vadd.f32 %v3420_v48, %v756_v20  ;;  %v2744_v24 = vpop.f32.mrb[30].mxu0  ;;  %2817 = vmatprep.mubr.bf16.mxu1 %v975_v13  ;;  %v885_v25 = vadd.f32 %v3420_v48, %v884_v22  ;;  %v2776_v26 = vpop.f32.mrb[30].mxu1 }
 0x13c   : > { %v768_v27 = vadd.f32 %v2744_v24, %v3420_v48  ;;  %v759_v28 = vpop.f32.mrb[31].mxu0  ;;  %2818 = vmatmul.mubr.bf16.gmra.mrb[56].mxu1 %v976_v8  ;;  %v961_v29 = vmax.f32 %v893_v21, 0.0  ;;  %v896_v30 = vadd.f32 %v2776_v26, %v3420_v48  ;;  %v887_v31 = vpop.f32.mrb[31].mxu1  ;;  %v929_v35 = vmax.f32 %v765_v19, 0.0 }
 0x13d   : > { %v760_v32 = vadd.f32 %v3420_v48, %v759_v28  ;;  %v959_v33 = vmax.f32 %v885_v25, 0.0  ;;  %v888_v34 = vadd.f32 %v3420_v48, %v887_v31  ;;  %v927_v38 = vmax.f32 %v757_v23, 0.0  ;;  %v3016_v48 = vld [vmem:[%s4274_s5 + $0x38] sm:$0xff]  }
 0x13e   : > { %v930_v36 = vmax.f32 %v768_v27, 0.0  ;;  %v962_v37 = vmax.f32 %v896_v30, 0.0  ;;  %2871 = vmatprep.subr.bf16.mxu0 %v3016_v48 }
 0x13f   : > { %v928_v41 = vmax.f32 %v760_v32, 0.0  ;;  %v960_v43 = vmax.f32 %v888_v34, 0.0  ;;  %2872 = vmatpush3.bf16.msra.mxu0 %v3016_v48 }
 0x140   : > { %v978_v47 = vpack.c.bf16 %v930_v36, %v929_v35  ;;  %v994_v49 = vpack.c.bf16 %v962_v37, %v961_v29 }
 0x141   : > { %v977_v50 = vpack.c.bf16 %v928_v41, %v927_v38  ;;  %v993_v51 = vpack.c.bf16 %v960_v43, %v959_v33 }
 0x143   : > { %2821 = vmatprep.mubr.bf16.mxu1 %v977_v50 }
 0x144   : > { %2822 = vmatmul.mubr.bf16.gmra.mrb[60].mxu1 %v978_v47 }
 0x145   : > { %2825 = vmatprep.mubr.bf16.mxu1 %v3441_v16 }
 0x14c   : > { %2826 = vmatmul.mubr.bf16.gmra.mrb[64].mxu1 %v3436_v12  ;;  %v3549_v12 = vld [vmem:[%s4273_s4] ss:$0 sm:$0xff] }
 0x14d   : > { %2829 = vmatprep.mubr.bf16.mxu1 %v3459_v46 }
 0x154   : > { %2830 = vmatmul.mubr.bf16.gmra.mrb[68].mxu1 %v3454_v42 }
 0x155   : > { %2833 = vmatprep.mubr.bf16.mxu1 %v3477_v14 }
 0x15c   : > { %2834 = vmatmul.mubr.bf16.gmra.mrb[72].mxu1 %v3472_v9 }
 0x15d   : > { %2837 = vmatprep.mubr.bf16.mxu1 %v3489_v44 }
 0x164   : > { %2838 = vmatmul.mubr.bf16.gmra.mrb[76].mxu1 %v3487_v40 }
 0x165   : > { %2841 = vmatprep.mubr.bf16.mxu1 %v3501_v11 }
 0x16c   : > { %2842 = vmatmul.mubr.bf16.gmra.mrb[80].mxu1 %v3499_v7 }
 0x16d   : > { %2845 = vmatprep.mubr.bf16.mxu1 %v3513_v45 }
 0x174   : > { %2846 = vmatmul.mubr.bf16.gmra.mrb[84].mxu1 %v3511_v39 }
 0x175   : > { %2849 = vmatprep.mubr.bf16.mxu1 %v991_v17 }
 0x17c   : > { %2850 = vmatmul.mubr.bf16.gmra.mrb[88].mxu1 %v992_v10 }
 0x17d   : > { %2853 = vmatprep.mubr.bf16.mxu1 %v993_v51 }
 0x184   : > { %2854 = vmatmul.mubr.bf16.gmra.mrb[92].mxu1 %v994_v49 }
 0x1df   : > { %v2795_v16 = vpop.f32.mrb[32].mxu1 }
 0x1e0   : > { %v1109_v42 = vadd.f32 %v2795_v16, %v3549_v12  ;;  %v1100_v46 = vpop.f32.mrb[33].mxu1 }
 0x1e1   : > { %v1101_v9 = vadd.f32 %v3549_v12, %v1100_v46  ;;  %v2796_v14 = vpop.f32.mrb[34].mxu1 }
 0x1e2   : > { %v1112_v40 = vadd.f32 %v2796_v14, %v3549_v12  ;;  %v1103_v44 = vpop.f32.mrb[35].mxu1  ;;  %v1357_v11 = vmax.f32 %v1109_v42, 0.0 }
 0x1e3   : > { %v1104_v7 = vadd.f32 %v3549_v12, %v1103_v44  ;;  %v1355_v45 = vmax.f32 %v1101_v9, 0.0 }
 0x1e4   : > { %v1358_v39 = vmax.f32 %v1112_v40, 0.0 }
 0x1e5   : > { %v1356_v52 = vmax.f32 %v1104_v7, 0.0 }
 0x1e6   : > { %v1420_v53 = vpack.c.bf16 %v1358_v39, %v1357_v11 }
 0x1e7   : > { %v1419_v54 = vpack.c.bf16 %v1356_v52, %v1355_v45  ;;  %v2799_v55 = vpop.f32.mrb[36].mxu1 }
 0x1e8   : > { %v1125_v56 = vadd.f32 %v2799_v55, %v3549_v12  ;;  %v1116_v57 = vpop.f32.mrb[37].mxu1 }
 0x1e9   : > { %v1117_v58 = vadd.f32 %v3549_v12, %v1116_v57  ;;  %v2800_v59 = vpop.f32.mrb[38].mxu1  ;;  %2873 = vmatprep.mubr.bf16.mxu0 %v1419_v54 }
 0x1ea   : > { %v1128_v60 = vadd.f32 %v2800_v59, %v3549_v12  ;;  %v1119_v61 = vpop.f32.mrb[39].mxu1  ;;  %2874 = vmatmul.mubr.bf16.vlgmr.msra.gmra.mrb[32].mxu0 %v1420_v53  ;;  %v1361_v63 = vmax.f32 %v1125_v56, 0.0 }
 0x1eb   : > { %v1120_v62 = vadd.f32 %v3549_v12, %v1119_v61  ;;  %v1359_v1 = vmax.f32 %v1117_v58, 0.0 }
 0x1ec   : > { %v1362_v0 = vmax.f32 %v1128_v60, 0.0 }
 0x1ed   : > { %v1360_v2 = vmax.f32 %v1120_v62, 0.0 }
 0x1ee   : > { %v1422_v3 = vpack.c.bf16 %v1362_v0, %v1361_v63 }
 0x1ef   : > { %v1421_v4 = vpack.c.bf16 %v1360_v2, %v1359_v1  ;;  %v2803_v5 = vpop.f32.mrb[40].mxu1 }
 0x1f0   : > { %v1141_v6 = vadd.f32 %v2803_v5, %v3549_v12  ;;  %v1132_v8 = vpop.f32.mrb[41].mxu1 }
 0x1f1   : > { %v1133_v10 = vadd.f32 %v3549_v12, %v1132_v8  ;;  %v2804_v13 = vpop.f32.mrb[42].mxu1  ;;  %2877 = vmatprep.mubr.bf16.mxu0 %v1421_v4 }
 0x1f2   : > { %v1144_v15 = vadd.f32 %v2804_v13, %v3549_v12  ;;  %v1135_v17 = vpop.f32.mrb[43].mxu1  ;;  %2878 = vmatmul.mubr.bf16.gmra.mrb[36].mxu0 %v1422_v3  ;;  %v1365_v19 = vmax.f32 %v1141_v6, 0.0 }
 0x1f3   : > { %v1136_v18 = vadd.f32 %v3549_v12, %v1135_v17  ;;  %v1363_v21 = vmax.f32 %v1133_v10, 0.0 }
 0x1f4   : > { %v1366_v20 = vmax.f32 %v1144_v15, 0.0 }
 0x1f5   : > { %v1364_v22 = vmax.f32 %v1136_v18, 0.0 }
 0x1f6   : > { %v1424_v23 = vpack.c.bf16 %v1366_v20, %v1365_v19 }
 0x1f7   : > { %v1423_v24 = vpack.c.bf16 %v1364_v22, %v1363_v21  ;;  %v2807_v25 = vpop.f32.mrb[44].mxu1 }
 0x1f8   : > { %v1157_v26 = vadd.f32 %v2807_v25, %v3549_v12  ;;  %v1148_v27 = vpop.f32.mrb[45].mxu1 }
 0x1f9   : > { %v1149_v28 = vadd.f32 %v3549_v12, %v1148_v27  ;;  %v2808_v29 = vpop.f32.mrb[46].mxu1  ;;  %2881 = vmatprep.mubr.bf16.mxu0 %v1423_v24 }
 0x1fa   : > { %v1160_v30 = vadd.f32 %v2808_v29, %v3549_v12  ;;  %v1151_v31 = vpop.f32.mrb[47].mxu1  ;;  %2882 = vmatmul.mubr.bf16.gmra.mrb[40].mxu0 %v1424_v23  ;;  %v1369_v33 = vmax.f32 %v1157_v26, 0.0 }
 0x1fb   : > { %v1152_v32 = vadd.f32 %v3549_v12, %v1151_v31  ;;  %v1367_v35 = vmax.f32 %v1149_v28, 0.0 }
 0x1fc   : > { %v1370_v34 = vmax.f32 %v1160_v30, 0.0 }
 0x1fd   : > { %v1368_v36 = vmax.f32 %v1152_v32, 0.0 }
 0x1fe   : > { %v1426_v37 = vpack.c.bf16 %v1370_v34, %v1369_v33 }
 0x1ff   : > { %v1425_v38 = vpack.c.bf16 %v1368_v36, %v1367_v35  ;;  %v2811_v41 = vpop.f32.mrb[48].mxu1 }
 0x200   : > { %v1173_v43 = vadd.f32 %v2811_v41, %v3549_v12  ;;  %v1164_v47 = vpop.f32.mrb[49].mxu1 }
 0x201   : > { %v1165_v49 = vadd.f32 %v3549_v12, %v1164_v47  ;;  %v2812_v50 = vpop.f32.mrb[50].mxu1  ;;  %2885 = vmatprep.mubr.bf16.mxu0 %v1425_v38 }
 0x202   : > { %v1176_v51 = vadd.f32 %v2812_v50, %v3549_v12  ;;  %v1167_v48 = vpop.f32.mrb[51].mxu1  ;;  %2886 = vmatmul.mubr.bf16.gmra.mrb[44].mxu0 %v1426_v37  ;;  %v1373_v42 = vmax.f32 %v1173_v43, 0.0 }
 0x203   : > { %v1168_v16 = vadd.f32 %v3549_v12, %v1167_v48  ;;  %v1371_v9 = vmax.f32 %v1165_v49, 0.0 }
 0x204   : > { %v1374_v46 = vmax.f32 %v1176_v51, 0.0 }
 0x205   : > { %v1372_v14 = vmax.f32 %v1168_v16, 0.0 }
 0x206   : > { %v1428_v40 = vpack.c.bf16 %v1374_v46, %v1373_v42 }
 0x207   : > { %v1427_v44 = vpack.c.bf16 %v1372_v14, %v1371_v9  ;;  %v2815_v7 = vpop.f32.mrb[52].mxu1 }
 0x208   : > { %v1189_v11 = vadd.f32 %v2815_v7, %v3549_v12  ;;  %v1180_v39 = vpop.f32.mrb[53].mxu1 }
 0x209   : > { %v1181_v45 = vadd.f32 %v3549_v12, %v1180_v39  ;;  %v2816_v52 = vpop.f32.mrb[54].mxu1  ;;  %2889 = vmatprep.mubr.bf16.mxu0 %v1427_v44 }
 0x20a   : > { %v1192_v53 = vadd.f32 %v2816_v52, %v3549_v12  ;;  %v1183_v54 = vpop.f32.mrb[55].mxu1  ;;  %2890 = vmatmul.mubr.bf16.gmra.mrb[48].mxu0 %v1428_v40  ;;  %v1377_v56 = vmax.f32 %v1189_v11, 0.0 }
 0x20b   : > { %v1184_v55 = vadd.f32 %v3549_v12, %v1183_v54  ;;  %v1375_v58 = vmax.f32 %v1181_v45, 0.0 }
 0x20c   : > { %v1378_v57 = vmax.f32 %v1192_v53, 0.0 }
 0x20d   : > { %v1376_v59 = vmax.f32 %v1184_v55, 0.0 }
 0x20e   : > { %v1430_v60 = vpack.c.bf16 %v1378_v57, %v1377_v56 }
 0x20f   : > { %v1429_v61 = vpack.c.bf16 %v1376_v59, %v1375_v58  ;;  %v2819_v62 = vpop.f32.mrb[56].mxu1 }
 0x210   : > { %v1205_v63 = vadd.f32 %v2819_v62, %v3549_v12  ;;  %v1196_v0 = vpop.f32.mrb[57].mxu1 }
 0x211   : > { %v1197_v1 = vadd.f32 %v3549_v12, %v1196_v0  ;;  %v2820_v2 = vpop.f32.mrb[58].mxu1  ;;  %2893 = vmatprep.mubr.bf16.mxu0 %v1429_v61 }
 0x212   : > { %v1208_v3 = vadd.f32 %v2820_v2, %v3549_v12  ;;  %v1199_v4 = vpop.f32.mrb[59].mxu1  ;;  %2894 = vmatmul.mubr.bf16.gmra.mrb[52].mxu0 %v1430_v60  ;;  %v1381_v6 = vmax.f32 %v1205_v63, 0.0 }
 0x213   : > { %v1200_v5 = vadd.f32 %v3549_v12, %v1199_v4  ;;  %v1379_v10 = vmax.f32 %v1197_v1, 0.0 }
 0x214   : > { %v1382_v8 = vmax.f32 %v1208_v3, 0.0 }
 0x215   : > { %v1380_v13 = vmax.f32 %v1200_v5, 0.0 }
 0x216   : > { %v1432_v15 = vpack.c.bf16 %v1382_v8, %v1381_v6 }
 0x217   : > { %v1431_v17 = vpack.c.bf16 %v1380_v13, %v1379_v10  ;;  %v2823_v18 = vpop.f32.mrb[60].mxu1 }
 0x218   : > { %v1221_v19 = vadd.f32 %v2823_v18, %v3549_v12  ;;  %v1212_v20 = vpop.f32.mrb[61].mxu1 }
 0x219   : > { %v1213_v21 = vadd.f32 %v3549_v12, %v1212_v20  ;;  %v2824_v22 = vpop.f32.mrb[62].mxu1  ;;  %2897 = vmatprep.mubr.bf16.mxu0 %v1431_v17 }
 0x21a   : > { %v1224_v23 = vadd.f32 %v2824_v22, %v3549_v12  ;;  %v1215_v24 = vpop.f32.mrb[63].mxu1  ;;  %2898 = vmatmul.mubr.bf16.gmra.mrb[56].mxu0 %v1432_v15  ;;  %v1385_v26 = vmax.f32 %v1221_v19, 0.0 }
 0x21b   : > { %v1216_v25 = vadd.f32 %v3549_v12, %v1215_v24  ;;  %v1383_v28 = vmax.f32 %v1213_v21, 0.0 }
 0x21c   : > { %v1386_v27 = vmax.f32 %v1224_v23, 0.0 }
 0x21d   : > { %v1384_v29 = vmax.f32 %v1216_v25, 0.0 }
 0x21e   : > { %v1434_v30 = vpack.c.bf16 %v1386_v27, %v1385_v26 }
 0x21f   : > { %v1433_v31 = vpack.c.bf16 %v1384_v29, %v1383_v28  ;;  %v2827_v32 = vpop.f32.mrb[64].mxu1 }
 0x220   : > { %v1237_v33 = vadd.f32 %v2827_v32, %v3549_v12  ;;  %v1228_v34 = vpop.f32.mrb[65].mxu1 }
 0x221   : > { %v1229_v35 = vadd.f32 %v3549_v12, %v1228_v34  ;;  %v2828_v36 = vpop.f32.mrb[66].mxu1  ;;  %2901 = vmatprep.mubr.bf16.mxu0 %v1433_v31 }
 0x222   : > { %v1240_v37 = vadd.f32 %v2828_v36, %v3549_v12  ;;  %v1231_v38 = vpop.f32.mrb[67].mxu1  ;;  %2902 = vmatmul.mubr.bf16.gmra.mrb[60].mxu0 %v1434_v30  ;;  %v1389_v43 = vmax.f32 %v1237_v33, 0.0 }
 0x223   : > { %v1232_v41 = vadd.f32 %v3549_v12, %v1231_v38  ;;  %v1387_v49 = vmax.f32 %v1229_v35, 0.0 }
 0x224   : > { %v1390_v47 = vmax.f32 %v1240_v37, 0.0 }
 0x225   : > { %v1388_v50 = vmax.f32 %v1232_v41, 0.0 }
 0x226   : > { %v1436_v51 = vpack.c.bf16 %v1390_v47, %v1389_v43 }
 0x227   : > { %v1435_v48 = vpack.c.bf16 %v1388_v50, %v1387_v49  ;;  %v2831_v16 = vpop.f32.mrb[68].mxu1 }
 0x228   : > { %v1253_v42 = vadd.f32 %v2831_v16, %v3549_v12  ;;  %v1244_v46 = vpop.f32.mrb[69].mxu1 }
 0x229   : > { %v1245_v9 = vadd.f32 %v3549_v12, %v1244_v46  ;;  %v2832_v14 = vpop.f32.mrb[70].mxu1  ;;  %2905 = vmatprep.mubr.bf16.mxu0 %v1435_v48 }
 0x22a   : > { %v1256_v40 = vadd.f32 %v2832_v14, %v3549_v12  ;;  %v1247_v44 = vpop.f32.mrb[71].mxu1  ;;  %2906 = vmatmul.mubr.bf16.gmra.mrb[64].mxu0 %v1436_v51  ;;  %v1393_v11 = vmax.f32 %v1253_v42, 0.0 }
 0x22b   : > { %v1248_v7 = vadd.f32 %v3549_v12, %v1247_v44  ;;  %v1391_v45 = vmax.f32 %v1245_v9, 0.0 }
 0x22c   : > { %v1394_v39 = vmax.f32 %v1256_v40, 0.0 }
 0x22d   : > { %v1392_v52 = vmax.f32 %v1248_v7, 0.0 }
 0x22e   : > { %v1438_v53 = vpack.c.bf16 %v1394_v39, %v1393_v11 }
 0x22f   : > { %v1437_v54 = vpack.c.bf16 %v1392_v52, %v1391_v45  ;;  %v2835_v55 = vpop.f32.mrb[72].mxu1 }
 0x230   : > { %v1269_v56 = vadd.f32 %v2835_v55, %v3549_v12  ;;  %v1260_v57 = vpop.f32.mrb[73].mxu1 }
 0x231   : > { %v1261_v58 = vadd.f32 %v3549_v12, %v1260_v57  ;;  %v2836_v59 = vpop.f32.mrb[74].mxu1  ;;  %2909 = vmatprep.mubr.bf16.mxu0 %v1437_v54 }
 0x232   : > { %v1272_v60 = vadd.f32 %v2836_v59, %v3549_v12  ;;  %v1263_v61 = vpop.f32.mrb[75].mxu1  ;;  %2910 = vmatmul.mubr.bf16.gmra.mrb[68].mxu0 %v1438_v53  ;;  %v1397_v63 = vmax.f32 %v1269_v56, 0.0 }
 0x233   : > { %v1264_v62 = vadd.f32 %v3549_v12, %v1263_v61  ;;  %v1395_v1 = vmax.f32 %v1261_v58, 0.0 }
 0x234   : > { %v1398_v0 = vmax.f32 %v1272_v60, 0.0 }
 0x235   : > { %v1396_v2 = vmax.f32 %v1264_v62, 0.0 }
 0x236   : > { %v1440_v3 = vpack.c.bf16 %v1398_v0, %v1397_v63 }
 0x237   : > { %v1439_v4 = vpack.c.bf16 %v1396_v2, %v1395_v1  ;;  %v2839_v5 = vpop.f32.mrb[76].mxu1 }
 0x238   : > { %v1285_v6 = vadd.f32 %v2839_v5, %v3549_v12  ;;  %v1276_v8 = vpop.f32.mrb[77].mxu1 }
 0x239   : > { %v1277_v10 = vadd.f32 %v3549_v12, %v1276_v8  ;;  %v2840_v13 = vpop.f32.mrb[78].mxu1  ;;  %2913 = vmatprep.mubr.bf16.mxu0 %v1439_v4 }
 0x23a   : > { %v1288_v15 = vadd.f32 %v2840_v13, %v3549_v12  ;;  %v1279_v17 = vpop.f32.mrb[79].mxu1  ;;  %2914 = vmatmul.mubr.bf16.gmra.mrb[72].mxu0 %v1440_v3  ;;  %v1401_v19 = vmax.f32 %v1285_v6, 0.0 }
 0x23b   : > { %v1280_v18 = vadd.f32 %v3549_v12, %v1279_v17  ;;  %v1399_v21 = vmax.f32 %v1277_v10, 0.0 }
 0x23c   : > { %v1402_v20 = vmax.f32 %v1288_v15, 0.0 }
 0x23d   : > { %v1400_v22 = vmax.f32 %v1280_v18, 0.0  ;;  %v3618_v18 = vld [vmem:[%s4275_s6] ss:$0 sm:$0xff] }
 0x23e   : > { %v1442_v23 = vpack.c.bf16 %v1402_v20, %v1401_v19 }
 0x23f   : > { %v1441_v24 = vpack.c.bf16 %v1400_v22, %v1399_v21  ;;  %v2843_v25 = vpop.f32.mrb[80].mxu1 }
 0x240   : > { %v1301_v26 = vadd.f32 %v2843_v25, %v3549_v12  ;;  %v1292_v27 = vpop.f32.mrb[81].mxu1 }
 0x241   : > { %v1293_v28 = vadd.f32 %v3549_v12, %v1292_v27  ;;  %v2844_v29 = vpop.f32.mrb[82].mxu1  ;;  %2917 = vmatprep.mubr.bf16.mxu0 %v1441_v24 }
 0x242   : > { %v1304_v30 = vadd.f32 %v2844_v29, %v3549_v12  ;;  %v1295_v31 = vpop.f32.mrb[83].mxu1  ;;  %2918 = vmatmul.mubr.bf16.gmra.mrb[76].mxu0 %v1442_v23  ;;  %v1405_v33 = vmax.f32 %v1301_v26, 0.0 }
 0x243   : > { %v1296_v32 = vadd.f32 %v3549_v12, %v1295_v31  ;;  %v1403_v35 = vmax.f32 %v1293_v28, 0.0 }
 0x244   : > { %v1406_v34 = vmax.f32 %v1304_v30, 0.0 }
 0x245   : > { %v1404_v36 = vmax.f32 %v1296_v32, 0.0 }
 0x246   : > { %v1444_v37 = vpack.c.bf16 %v1406_v34, %v1405_v33 }
 0x247   : > { %v1443_v38 = vpack.c.bf16 %v1404_v36, %v1403_v35  ;;  %v2847_v41 = vpop.f32.mrb[84].mxu1 }
 0x248   : > { %v1317_v43 = vadd.f32 %v2847_v41, %v3549_v12  ;;  %v1308_v47 = vpop.f32.mrb[85].mxu1 }
 0x249   : > { %v1309_v49 = vadd.f32 %v3549_v12, %v1308_v47  ;;  %v2848_v50 = vpop.f32.mrb[86].mxu1  ;;  %2921 = vmatprep.mubr.bf16.mxu0 %v1443_v38 }
 0x24a   : > { %v1320_v51 = vadd.f32 %v2848_v50, %v3549_v12  ;;  %v1311_v48 = vpop.f32.mrb[87].mxu1  ;;  %2922 = vmatmul.mubr.bf16.gmra.mrb[80].mxu0 %v1444_v37  ;;  %v1409_v42 = vmax.f32 %v1317_v43, 0.0 }
 0x24b   : > { %v1312_v16 = vadd.f32 %v3549_v12, %v1311_v48  ;;  %v1407_v9 = vmax.f32 %v1309_v49, 0.0 }
 0x24c   : > { %v1410_v46 = vmax.f32 %v1320_v51, 0.0 }
 0x24d   : > { %v1408_v14 = vmax.f32 %v1312_v16, 0.0 }
 0x24e   : > { %v1446_v40 = vpack.c.bf16 %v1410_v46, %v1409_v42 }
 0x24f   : > { %v1445_v44 = vpack.c.bf16 %v1408_v14, %v1407_v9  ;;  %v2851_v7 = vpop.f32.mrb[88].mxu1 }
 0x250   : > { %v1333_v11 = vadd.f32 %v2851_v7, %v3549_v12  ;;  %v1324_v39 = vpop.f32.mrb[89].mxu1 }
 0x251   : > { %v1325_v45 = vadd.f32 %v3549_v12, %v1324_v39  ;;  %v2852_v52 = vpop.f32.mrb[90].mxu1  ;;  %2925 = vmatprep.mubr.bf16.mxu0 %v1445_v44 }
 0x252   : > { %v1336_v53 = vadd.f32 %v2852_v52, %v3549_v12  ;;  %v1327_v54 = vpop.f32.mrb[91].mxu1  ;;  %2926 = vmatmul.mubr.bf16.gmra.mrb[84].mxu0 %v1446_v40  ;;  %v1413_v56 = vmax.f32 %v1333_v11, 0.0 }
 0x253   : > { %v1328_v55 = vadd.f32 %v3549_v12, %v1327_v54  ;;  %v1411_v58 = vmax.f32 %v1325_v45, 0.0 }
 0x254   : > { %v1414_v57 = vmax.f32 %v1336_v53, 0.0 }
 0x255   : > { %v1412_v59 = vmax.f32 %v1328_v55, 0.0 }
 0x256   : > { %v1448_v60 = vpack.c.bf16 %v1414_v57, %v1413_v56 }
 0x257   : > { %v1447_v61 = vpack.c.bf16 %v1412_v59, %v1411_v58  ;;  %v2855_v62 = vpop.f32.mrb[92].mxu1 }
 0x258   : > { %v1349_v63 = vadd.f32 %v2855_v62, %v3549_v12  ;;  %v1340_v0 = vpop.f32.mrb[93].mxu1 }
 0x259   : > { %v1341_v1 = vadd.f32 %v3549_v12, %v1340_v0  ;;  %v2856_v2 = vpop.f32.mrb[94].mxu1  ;;  %2929 = vmatprep.mubr.bf16.mxu0 %v1447_v61 }
 0x25a   : > { %v1352_v3 = vadd.f32 %v2856_v2, %v3549_v12  ;;  %v1343_v4 = vpop.f32.mrb[95].mxu1  ;;  %2930 = vmatmul.mubr.bf16.gmra.mrb[88].mxu0 %v1448_v60  ;;  %v1417_v6 = vmax.f32 %v1349_v63, 0.0 }
 0x25b   : > { %v1344_v5 = vadd.f32 %v3549_v12, %v1343_v4  ;;  %v1415_v10 = vmax.f32 %v1341_v1, 0.0 }
 0x25c   : > { %v1418_v8 = vmax.f32 %v1352_v3, 0.0 }
 0x25d   : > { %v1416_v13 = vmax.f32 %v1344_v5, 0.0 }
 0x25e   : > { %v1450_v15 = vpack.c.bf16 %v1418_v8, %v1417_v6 }
 0x25f   : > { %v1449_v17 = vpack.c.bf16 %v1416_v13, %v1415_v10 }
 0x261   : > { %2933 = vmatprep.mubr.bf16.mxu0 %v1449_v17 }
 0x262   : > { %2934 = vmatmul.mubr.bf16.gmra.mrb[92].mxu0 %v1450_v15 }
 0x2bd   : > { %v2875_v19 = vpop.f32.mrb[32].mxu0 }
 0x2be   : > { %v3621_v20 = vadd.f32 %v2875_v19, %v3618_v18  ;;  %v1556_v21 = vpop.f32.mrb[33].mxu0 }
 0x2bf   : > { %v3624_v12 = vadd.f32 %v3618_v18, %v1556_v21  ;;  %v2876_v22 = vpop.f32.mrb[34].mxu0 }
 0x2c0   : > { %1815 = vmax.xlane.f32.xlu1 %v3621_v20  ;;  %v1559_v23 = vpop.f32.mrb[35].mxu0  ;;  %v3629_v24 = vadd.f32 %v2876_v22, %v3618_v18 }
 0x2c1   : > { %1811 = vmax.xlane.f32.xlu0 %v3624_v12  ;;  %v3632_v25 = vadd.f32 %v3618_v18, %v1559_v23 }
 0x2c4   : > { %1817 = vmax.xlane.f32.xlu1 %v3629_v24 }
 0x2c5   : > { %v2879_v26 = vpop.f32.mrb[36].mxu0  ;;  %1813 = vmax.xlane.f32.xlu0 %v3632_v25 }
 0x2c6   : > { %v3637_v27 = vadd.f32 %v2879_v26, %v3618_v18  ;;  %v1572_v28 = vpop.f32.mrb[37].mxu0 }
 0x2c7   : > { %v2880_v29 = vpop.f32.mrb[38].mxu0  ;;  %v3645_v32 = vadd.f32 %v3618_v18, %v1572_v28 }
 0x2c8   : > { %v3640_v30 = vadd.f32 %v2880_v29, %v3618_v18  ;;  %v1575_v31 = vpop.f32.mrb[39].mxu0 }
 0x2c9   : > { %1823 = vmax.xlane.f32.xlu0 %v3637_v27  ;;  %v3648_v33 = vadd.f32 %v3618_v18, %v1575_v31 }
 0x2ca   : > { %1825 = vmax.xlane.f32.xlu1 %v3640_v30 }
 0x2cd   : > { %v2883_v34 = vpop.f32.mrb[40].mxu0  ;;  %1819 = vmax.xlane.f32.xlu0 %v3645_v32 }
 0x2ce   : > { %v3652_v35 = vadd.f32 %v2883_v34, %v3618_v18  ;;  %v1588_v36 = vpop.f32.mrb[41].mxu0  ;;  %1821 = vmax.xlane.f32.xlu1 %v3648_v33 }
 0x2cf   : > { %v2884_v37 = vpop.f32.mrb[42].mxu0  ;;  %v3661_v43 = vadd.f32 %v3618_v18, %v1588_v36 }
 0x2d0   : > { %v3656_v38 = vadd.f32 %v2884_v37, %v3618_v18  ;;  %v1591_v41 = vpop.f32.mrb[43].mxu0 }
 0x2d1   : > { %1831 = vmax.xlane.f32.xlu0 %v3652_v35  ;;  %v3664_v47 = vadd.f32 %v3618_v18, %v1591_v41 }
 0x2d2   : > { %1833 = vmax.xlane.f32.xlu1 %v3656_v38 }
 0x2d5   : > { %v2887_v49 = vpop.f32.mrb[44].mxu0  ;;  %1827 = vmax.xlane.f32.xlu0 %v3661_v43 }
 0x2d6   : > { %v3668_v50 = vadd.f32 %v2887_v49, %v3618_v18  ;;  %v1604_v51 = vpop.f32.mrb[45].mxu0  ;;  %1829 = vmax.xlane.f32.xlu1 %v3664_v47 }
 0x2d7   : > { %v2888_v48 = vpop.f32.mrb[46].mxu0  ;;  %v3677_v46 = vadd.f32 %v3618_v18, %v1604_v51 }
 0x2d8   : > { %v3672_v16 = vadd.f32 %v2888_v48, %v3618_v18  ;;  %v1607_v42 = vpop.f32.mrb[47].mxu0 }
 0x2d9   : > { %1839 = vmax.xlane.f32.xlu0 %v3668_v50  ;;  %v3680_v9 = vadd.f32 %v3618_v18, %v1607_v42 }
 0x2da   : > { %1841 = vmax.xlane.f32.xlu1 %v3672_v16 }
 0x2dd   : > { %v2891_v14 = vpop.f32.mrb[48].mxu0  ;;  %1835 = vmax.xlane.f32.xlu0 %v3677_v46 }
 0x2de   : > { %v3684_v40 = vadd.f32 %v2891_v14, %v3618_v18  ;;  %v1620_v44 = vpop.f32.mrb[49].mxu0  ;;  %1837 = vmax.xlane.f32.xlu1 %v3680_v9 }
 0x2df   : > { %v2892_v7 = vpop.f32.mrb[50].mxu0  ;;  %v3693_v45 = vadd.f32 %v3618_v18, %v1620_v44 }
 0x2e0   : > { %v3688_v11 = vadd.f32 %v2892_v7, %v3618_v18  ;;  %v1623_v39 = vpop.f32.mrb[51].mxu0 }
 0x2e1   : > { %1847 = vmax.xlane.f32.xlu0 %v3684_v40  ;;  %v3696_v52 = vadd.f32 %v3618_v18, %v1623_v39 }
 0x2e2   : > { %1849 = vmax.xlane.f32.xlu1 %v3688_v11 }
 0x2e5   : > { %v2895_v53 = vpop.f32.mrb[52].mxu0  ;;  %1843 = vmax.xlane.f32.xlu0 %v3693_v45 }
 0x2e6   : > { %v3700_v54 = vadd.f32 %v2895_v53, %v3618_v18  ;;  %v1636_v55 = vpop.f32.mrb[53].mxu0  ;;  %1845 = vmax.xlane.f32.xlu1 %v3696_v52 }
 0x2e7   : > { %v2896_v56 = vpop.f32.mrb[54].mxu0  ;;  %v3709_v59 = vadd.f32 %v3618_v18, %v1636_v55 }
 0x2e8   : > { %v3704_v57 = vadd.f32 %v2896_v56, %v3618_v18  ;;  %v1639_v58 = vpop.f32.mrb[55].mxu0 }
 0x2e9   : > { %1855 = vmax.xlane.f32.xlu0 %v3700_v54  ;;  %v3712_v60 = vadd.f32 %v3618_v18, %v1639_v58 }
 0x2ea   : > { %1857 = vmax.xlane.f32.xlu1 %v3704_v57 }
 0x2ed   : > { %v2899_v61 = vpop.f32.mrb[56].mxu0  ;;  %1851 = vmax.xlane.f32.xlu0 %v3709_v59 }
 0x2ee   : > { %v3716_v62 = vadd.f32 %v2899_v61, %v3618_v18  ;;  %v1652_v63 = vpop.f32.mrb[57].mxu0  ;;  %1853 = vmax.xlane.f32.xlu1 %v3712_v60 }
 0x2ef   : > { %v2900_v0 = vpop.f32.mrb[58].mxu0  ;;  %v3725_v3 = vadd.f32 %v3618_v18, %v1652_v63 }
 0x2f0   : > { %v3720_v1 = vadd.f32 %v2900_v0, %v3618_v18  ;;  %v1655_v2 = vpop.f32.mrb[59].mxu0 }
 0x2f1   : > { %1863 = vmax.xlane.f32.xlu0 %v3716_v62  ;;  %v3728_v4 = vadd.f32 %v3618_v18, %v1655_v2 }
 0x2f2   : > { %1865 = vmax.xlane.f32.xlu1 %v3720_v1 }
 0x2f5   : > { %v2903_v5 = vpop.f32.mrb[60].mxu0  ;;  %1859 = vmax.xlane.f32.xlu0 %v3725_v3 }
 0x2f6   : > { %v3732_v6 = vadd.f32 %v2903_v5, %v3618_v18  ;;  %v1668_v8 = vpop.f32.mrb[61].mxu0  ;;  %1861 = vmax.xlane.f32.xlu1 %v3728_v4 }
 0x2f7   : > { %v2904_v10 = vpop.f32.mrb[62].mxu0  ;;  %v3741_v17 = vadd.f32 %v3618_v18, %v1668_v8 }
 0x2f8   : > { %v3736_v13 = vadd.f32 %v2904_v10, %v3618_v18  ;;  %v1671_v15 = vpop.f32.mrb[63].mxu0 }
 0x2f9   : > { %1871 = vmax.xlane.f32.xlu0 %v3732_v6  ;;  %v3744_v19 = vadd.f32 %v3618_v18, %v1671_v15 }
 0x2fa   : > { %1873 = vmax.xlane.f32.xlu1 %v3736_v13 }
 0x2fd   : > { %v2907_v21 = vpop.f32.mrb[64].mxu0  ;;  %1867 = vmax.xlane.f32.xlu0 %v3741_v17 }
 0x2fe   : > { %v3748_v22 = vadd.f32 %v2907_v21, %v3618_v18  ;;  %v1684_v23 = vpop.f32.mrb[65].mxu0  ;;  %1869 = vmax.xlane.f32.xlu1 %v3744_v19 }
 0x2ff   : > { %v2908_v26 = vpop.f32.mrb[66].mxu0  ;;  %v3757_v31 = vadd.f32 %v3618_v18, %v1684_v23 }
 0x300   : > { %v3752_v28 = vadd.f32 %v2908_v26, %v3618_v18  ;;  %v1687_v29 = vpop.f32.mrb[67].mxu0 }
 0x301   : > { %1879 = vmax.xlane.f32.xlu0 %v3748_v22  ;;  %v3760_v34 = vadd.f32 %v3618_v18, %v1687_v29 }
 0x302   : > { %1881 = vmax.xlane.f32.xlu1 %v3752_v28 }
 0x305   : > { %v2911_v36 = vpop.f32.mrb[68].mxu0  ;;  %1875 = vmax.xlane.f32.xlu0 %v3757_v31 }
 0x306   : > { %v3764_v37 = vadd.f32 %v2911_v36, %v3618_v18  ;;  %v1700_v41 = vpop.f32.mrb[69].mxu0  ;;  %1877 = vmax.xlane.f32.xlu1 %v3760_v34 }
 0x307   : > { %v2912_v49 = vpop.f32.mrb[70].mxu0  ;;  %v3773_v42 = vadd.f32 %v3618_v18, %v1700_v41 }
 0x308   : > { %v3768_v51 = vadd.f32 %v2912_v49, %v3618_v18  ;;  %v1703_v48 = vpop.f32.mrb[71].mxu0 }
 0x309   : > { %1887 = vmax.xlane.f32.xlu0 %v3764_v37  ;;  %v3776_v14 = vadd.f32 %v3618_v18, %v1703_v48 }
 0x30a   : > { %1889 = vmax.xlane.f32.xlu1 %v3768_v51 }
 0x30d   : > { %v2915_v44 = vpop.f32.mrb[72].mxu0  ;;  %1883 = vmax.xlane.f32.xlu0 %v3773_v42 }
 0x30e   : > { %v3780_v7 = vadd.f32 %v2915_v44, %v3618_v18  ;;  %v1716_v39 = vpop.f32.mrb[73].mxu0  ;;  %1885 = vmax.xlane.f32.xlu1 %v3776_v14 }
 0x30f   : > { %v2916_v53 = vpop.f32.mrb[74].mxu0  ;;  %v3789_v58 = vadd.f32 %v3618_v18, %v1716_v39 }
 0x310   : > { %v3784_v55 = vadd.f32 %v2916_v53, %v3618_v18  ;;  %v1719_v56 = vpop.f32.mrb[75].mxu0 }
 0x311   : > { %1895 = vmax.xlane.f32.xlu0 %v3780_v7  ;;  %v3792_v61 = vadd.f32 %v3618_v18, %v1719_v56 }
 0x312   : > { %1897 = vmax.xlane.f32.xlu1 %v3784_v55 }
 0x315   : > { %v2919_v63 = vpop.f32.mrb[76].mxu0  ;;  %1891 = vmax.xlane.f32.xlu0 %v3789_v58 }
 0x316   : > { %v3796_v0 = vadd.f32 %v2919_v63, %v3618_v18  ;;  %v1732_v2 = vpop.f32.mrb[77].mxu0  ;;  %1893 = vmax.xlane.f32.xlu1 %v3792_v61 }
 0x317   : > { %v2920_v5 = vpop.f32.mrb[78].mxu0  ;;  %v3805_v15 = vadd.f32 %v3618_v18, %v1732_v2 }
 0x318   : > { %v3800_v8 = vadd.f32 %v2920_v5, %v3618_v18  ;;  %v1735_v10 = vpop.f32.mrb[79].mxu0 }
 0x319   : > { %1903 = vmax.xlane.f32.xlu0 %v3796_v0  ;;  %v3808_v21 = vadd.f32 %v3618_v18, %v1735_v10 }
 0x31a   : > { %1905 = vmax.xlane.f32.xlu1 %v3800_v8 }
 0x31d   : > { %v2923_v23 = vpop.f32.mrb[80].mxu0  ;;  %1899 = vmax.xlane.f32.xlu0 %v3805_v15 }
 0x31e   : > { %v3812_v26 = vadd.f32 %v2923_v23, %v3618_v18  ;;  %v1748_v29 = vpop.f32.mrb[81].mxu0  ;;  %1901 = vmax.xlane.f32.xlu1 %v3808_v21 }
 0x31f   : > { %v2924_v36 = vpop.f32.mrb[82].mxu0  ;;  %v3821_v48 = vadd.f32 %v3618_v18, %v1748_v29 }
 0x320   : > { %v3816_v41 = vadd.f32 %v2924_v36, %v3618_v18  ;;  %v1751_v49 = vpop.f32.mrb[83].mxu0 }
 0x321   : > { %1911 = vmax.xlane.f32.xlu0 %v3812_v26  ;;  %4301 = vst [vmem:[#allocation2_spill] sm:$0xff] %v3821_v48  ;;  %v3824_v44 = vadd.f32 %v3618_v18, %v1751_v49 }
 0x322   : > { %1913 = vmax.xlane.f32.xlu1 %v3816_v41 }
 0x323   : > { %4302 = vst [vmem:[#allocation3_spill] sm:$0xff] %v3824_v44 }
 0x325   : > { %v2927_v39 = vpop.f32.mrb[84].mxu0  ;;  %1907 = vmax.xlane.f32.xlu0 %v3821_v48 }
 0x326   : > { %v3828_v53 = vadd.f32 %v2927_v39, %v3618_v18  ;;  %v1764_v56 = vpop.f32.mrb[85].mxu0  ;;  %1909 = vmax.xlane.f32.xlu1 %v3824_v44 }
 0x327   : > { %v2928_v63 = vpop.f32.mrb[86].mxu0  ;;  %v3837_v10 = vadd.f32 %v3618_v18, %v1764_v56 }
 0x328   : > { %4303 = vst [vmem:[#allocation4_spill] sm:$0xff] %v3828_v53  ;;  %v3832_v2 = vadd.f32 %v2928_v63, %v3618_v18  ;;  %v1767_v5 = vpop.f32.mrb[87].mxu0 }
 0x329   : > { %1919 = vmax.xlane.f32.xlu0 %v3828_v53  ;;  %4305 = vst [vmem:[#allocation6_spill] sm:$0xff] %v3837_v10  ;;  %v3840_v23 = vadd.f32 %v3618_v18, %v1767_v5 }
 0x32a   : > { %4304 = vst [vmem:[#allocation5_spill] sm:$0xff] %v3832_v2  ;;  %1921 = vmax.xlane.f32.xlu1 %v3832_v2 }
 0x32b   : > { %4306 = vst [vmem:[#allocation7_spill] sm:$0xff] %v3840_v23 }
 0x32d   : > { %v2931_v29 = vpop.f32.mrb[88].mxu0  ;;  %1915 = vmax.xlane.f32.xlu0 %v3837_v10 }
 0x32e   : > { %v3844_v36 = vadd.f32 %v2931_v29, %v3618_v18  ;;  %v1780_v49 = vpop.f32.mrb[89].mxu0  ;;  %1917 = vmax.xlane.f32.xlu1 %v3840_v23 }
 0x32f   : > { %v2932_v39 = vpop.f32.mrb[90].mxu0  ;;  %v3853_v56 = vadd.f32 %v3618_v18, %v1780_v49 }
 0x330   : > { %4307 = vst [vmem:[#allocation8_spill] sm:$0xff] %v3844_v36  ;;  %v3848_v63 = vadd.f32 %v2932_v39, %v3618_v18  ;;  %v1783_v2 = vpop.f32.mrb[91].mxu0 }
 0x331   : > { %1927 = vmax.xlane.f32.xlu0 %v3844_v36  ;;  %4309 = vst [vmem:[#allocation10_spill] sm:$0xff] %v3853_v56  ;;  %v3856_v5 = vadd.f32 %v3618_v18, %v1783_v2 }
 0x332   : > { %4308 = vst [vmem:[#allocation9_spill] sm:$0xff] %v3848_v63  ;;  %1929 = vmax.xlane.f32.xlu1 %v3848_v63 }
 0x333   : > { %4310 = vst [vmem:[#allocation11_spill] sm:$0xff] %v3856_v5 }
 0x335   : > { %v2935_v29 = vpop.f32.mrb[92].mxu0  ;;  %1923 = vmax.xlane.f32.xlu0 %v3853_v56 }
 0x336   : > { %v3860_v23 = vadd.f32 %v2935_v29, %v3618_v18  ;;  %v1796_v10 = vpop.f32.mrb[93].mxu0  ;;  %1925 = vmax.xlane.f32.xlu1 %v3856_v5 }
 0x337   : > { %v2936_v39 = vpop.f32.mrb[94].mxu0  ;;  %v3869_v2 = vadd.f32 %v3618_v18, %v1796_v10 }
 0x338   : > { %4311 = vst [vmem:[#allocation12_spill] sm:$0xff] %v3860_v23  ;;  %v3864_v36 = vadd.f32 %v2936_v39, %v3618_v18  ;;  %v1799_v63 = vpop.f32.mrb[95].mxu0 }
 0x339   : > { %1935 = vmax.xlane.f32.xlu0 %v3860_v23  ;;  %4313 = vst [vmem:[#allocation14_spill] sm:$0xff] %v3869_v2  ;;  %v3872_v49 = vadd.f32 %v3618_v18, %v1799_v63 }
 0x33a   : > { %4312 = vst [vmem:[#allocation13_spill] sm:$0xff] %v3864_v36  ;;  %1937 = vmax.xlane.f32.xlu1 %v3864_v36 }
 0x33b   : > { %4314 = vst [vmem:[#allocation15_spill] sm:$0xff] %v3872_v49 }
 0x33d   : > { %1931 = vmax.xlane.f32.xlu0 %v3869_v2 }
 0x33e   : > { %1933 = vmax.xlane.f32.xlu1 %v3872_v49 }
 0x34d   : > { %v1816_v29 = vpop.xlane.xlu1 %1815 }
 0x34e   : > { %v1941_v5 = vsub.f32 %v3621_v20, %v1816_v29  ;;  %v1812_v39 = vpop.xlane.xlu0 %1811 }
 0x34f   : > { %v1939_v56 = vsub.f32 %v3624_v12, %v1812_v39 }
 0x350   : > { %v2007_v53 = vmul.f32 1.442695, %v1941_v5 }
 0x351   : > { %v2003_v23 = vmul.f32 1.442695, %v1939_v56  ;;  %v1818_v44 = vpop.xlane.xlu1 %1817 }
 0x352   : > { %3017 = vpow2.f32 %v2007_v53  ;;  %v1942_v10 = vsub.f32 %v3629_v24, %v1818_v44  ;;  %v1814_v36 = vpop.xlane.xlu0 %1813 }
 0x353   : > { %v1940_v18 = vsub.f32 %v3632_v25, %v1814_v36  ;;  %3019 = vpow2.f32 %v2003_v23 }
 0x354   : > { %v2009_v63 = vmul.f32 1.442695, %v1942_v10 }
 0x355   : > { %v2005_v2 = vmul.f32 1.442695, %v1940_v18 }
 0x356   : > { %3021 = vpow2.f32 %v2009_v63  ;;  %v1824_v49 = vpop.xlane.xlu0 %1823 }
 0x357   : > { %v1945_v48 = vsub.f32 %v3637_v27, %v1824_v49  ;;  %v1826_v20 = vpop.xlane.xlu1 %1825  ;;  %3023 = vpow2.f32 %v2005_v2 }
 0x358   : > { %v1946_v29 = vsub.f32 %v3640_v30, %v1826_v20 }
 0x359   : > { %v2015_v12 = vmul.f32 1.442695, %v1945_v48 }
 0x35a   : > { %v2017_v56 = vmul.f32 1.442695, %v1946_v29  ;;  %v1820_v5 = vpop.xlane.xlu0 %1819 }
 0x35b   : > { %3025 = vpow2.f32 %v2015_v12  ;;  %v1943_v24 = vsub.f32 %v3645_v32, %v1820_v5  ;;  %v1822_v44 = vpop.xlane.xlu1 %1821 }
 0x35c   : > { %v3883_v53 = vpop.eup %3017  ;;  %v1944_v25 = vsub.f32 %v3648_v33, %v1822_v44  ;;  %3027 = vpow2.f32 %v2017_v56 }
 0x35d   : > { %v2011_v23 = vmul.f32 1.442695, %v1943_v24  ;;  %2135 = vadd.xlane.f32.xlu0 %v3883_v53  ;;  %v3887_v49 = vpop.eup %3019 }
 0x35e   : > { %v2013_v27 = vmul.f32 1.442695, %v1944_v25  ;;  %v1832_v36 = vpop.xlane.xlu0 %1831 }
 0x35f   : > { %3029 = vpow2.f32 %v2011_v23  ;;  %v1949_v30 = vsub.f32 %v3652_v35, %v1832_v36  ;;  %v1834_v48 = vpop.xlane.xlu1 %1833 }
 0x360   : > { %v3890_v2 = vpop.eup %3021  ;;  %v1950_v32 = vsub.f32 %v3656_v38, %v1834_v48  ;;  %3031 = vpow2.f32 %v2013_v27 }
 0x361   : > { %v2023_v39 = vmul.f32 1.442695, %v1949_v30  ;;  %2137 = vadd.xlane.f32.xlu1 %v3890_v2  ;;  %2131 = vadd.xlane.f32.xlu0 %v3887_v49  ;;  %v3896_v20 = vpop.eup %3023 }
 0x362   : > { %v2025_v33 = vmul.f32 1.442695, %v1950_v32  ;;  %v1828_v10 = vpop.xlane.xlu0 %1827 }
 0x363   : > { %3033 = vpow2.f32 %v2023_v39  ;;  %v1947_v18 = vsub.f32 %v3661_v43, %v1828_v10  ;;  %v1830_v63 = vpop.xlane.xlu1 %1829 }
 0x364   : > { %v1948_v35 = vsub.f32 %v3664_v47, %v1830_v63  ;;  %3035 = vpow2.f32 %v2025_v33 }
 0x365   : > { %v3899_v29 = vpop.eup %3025  ;;  %v2019_v12 = vmul.f32 1.442695, %v1947_v18  ;;  %2133 = vadd.xlane.f32.xlu1 %v3896_v20 }
 0x366   : > { %v2021_v38 = vmul.f32 1.442695, %v1948_v35  ;;  %2143 = vadd.xlane.f32.xlu0 %v3899_v29  ;;  %v1840_v56 = vpop.xlane.xlu0 %1839  ;;  %v3904_v43 = vpop.eup %3027 }
 0x367   : > { %3037 = vpow2.f32 %v2019_v12  ;;  %v1953_v5 = vsub.f32 %v3668_v50, %v1840_v56  ;;  %v1842_v24 = vpop.xlane.xlu1 %1841 }
 0x368   : > { %v1954_v44 = vsub.f32 %v3672_v16, %v1842_v24  ;;  %3039 = vpow2.f32 %v2021_v38 }
 0x369   : > { %v3907_v25 = vpop.eup %3029  ;;  %v2031_v47 = vmul.f32 1.442695, %v1953_v5  ;;  %2145 = vadd.xlane.f32.xlu1 %v3904_v43 }
 0x36a   : > { %v2033_v23 = vmul.f32 1.442695, %v1954_v44  ;;  %2139 = vadd.xlane.f32.xlu0 %v3907_v25  ;;  %v1836_v27 = vpop.xlane.xlu0 %1835  ;;  %v3912_v50 = vpop.eup %3031 }
 0x36b   : > { %3041 = vpow2.f32 %v2031_v47  ;;  %v1951_v36 = vsub.f32 %v3677_v46, %v1836_v27  ;;  %v1838_v30 = vpop.xlane.xlu1 %1837 }
 0x36c   : > { %v1952_v48 = vsub.f32 %v3680_v9, %v1838_v30  ;;  %3043 = vpow2.f32 %v2033_v23 }
 0x36d   : > { %v3915_v32 = vpop.eup %3033  ;;  %v2027_v16 = vmul.f32 1.442695, %v1951_v36  ;;  %2141 = vadd.xlane.f32.xlu1 %v3912_v50 }
 0x36e   : > { %v2029_v39 = vmul.f32 1.442695, %v1952_v48  ;;  %2151 = vadd.xlane.f32.xlu0 %v3915_v32  ;;  %v1848_v33 = vpop.xlane.xlu0 %1847  ;;  %v3920_v46 = vpop.eup %3035 }
 0x36f   : > { %3045 = vpow2.f32 %v2027_v16  ;;  %v1957_v10 = vsub.f32 %v3684_v40, %v1848_v33  ;;  %v1850_v18 = vpop.xlane.xlu1 %1849 }
 0x370   : > { %v1958_v63 = vsub.f32 %v3688_v11, %v1850_v18  ;;  %3047 = vpow2.f32 %v2029_v39 }
 0x371   : > { %v3923_v35 = vpop.eup %3037  ;;  %v2039_v9 = vmul.f32 1.442695, %v1957_v10  ;;  %2153 = vadd.xlane.f32.xlu1 %v3920_v46 }
 0x372   : > { %v2041_v12 = vmul.f32 1.442695, %v1958_v63  ;;  %2147 = vadd.xlane.f32.xlu0 %v3923_v35  ;;  %v1844_v38 = vpop.xlane.xlu0 %1843  ;;  %v3928_v40 = vpop.eup %3039 }
 0x373   : > { %3049 = vpow2.f32 %v2039_v9  ;;  %v1955_v56 = vsub.f32 %v3693_v45, %v1844_v38  ;;  %v1846_v5 = vpop.xlane.xlu1 %1845 }
 0x374   : > { %v1956_v24 = vsub.f32 %v3696_v52, %v1846_v5  ;;  %3051 = vpow2.f32 %v2041_v12 }
 0x375   : > { %v3931_v44 = vpop.eup %3041  ;;  %v2035_v11 = vmul.f32 1.442695, %v1955_v56  ;;  %2149 = vadd.xlane.f32.xlu1 %v3928_v40 }
 0x376   : > { %v2037_v47 = vmul.f32 1.442695, %v1956_v24  ;;  %2159 = vadd.xlane.f32.xlu0 %v3931_v44  ;;  %v1856_v23 = vpop.xlane.xlu0 %1855  ;;  %v3936_v45 = vpop.eup %3043 }
 0x377   : > { %3053 = vpow2.f32 %v2035_v11  ;;  %v1961_v27 = vsub.f32 %v3700_v54, %v1856_v23  ;;  %v1858_v36 = vpop.xlane.xlu1 %1857 }
 0x378   : > { %v1962_v30 = vsub.f32 %v3704_v57, %v1858_v36  ;;  %3055 = vpow2.f32 %v2037_v47 }
 0x379   : > { %v3939_v48 = vpop.eup %3045  ;;  %v2047_v52 = vmul.f32 1.442695, %v1961_v27  ;;  %2161 = vadd.xlane.f32.xlu1 %v3936_v45 }
 0x37a   : > { %v2049_v16 = vmul.f32 1.442695, %v1962_v30  ;;  %2155 = vadd.xlane.f32.xlu0 %v3939_v48  ;;  %v1852_v39 = vpop.xlane.xlu0 %1851  ;;  %v3944_v54 = vpop.eup %3047 }
 0x37b   : > { %3057 = vpow2.f32 %v2047_v52  ;;  %v1959_v33 = vsub.f32 %v3709_v59, %v1852_v39  ;;  %v1854_v10 = vpop.xlane.xlu1 %1853 }
 0x37c   : > { %v1960_v18 = vsub.f32 %v3712_v60, %v1854_v10  ;;  %3059 = vpow2.f32 %v2049_v16 }
 0x37d   : > { %v3947_v63 = vpop.eup %3049  ;;  %v2043_v57 = vmul.f32 1.442695, %v1959_v33  ;;  %2157 = vadd.xlane.f32.xlu1 %v3944_v54 }
 0x37e   : > { %v2045_v9 = vmul.f32 1.442695, %v1960_v18  ;;  %2167 = vadd.xlane.f32.xlu0 %v3947_v63  ;;  %v1864_v12 = vpop.xlane.xlu0 %1863  ;;  %v3952_v59 = vpop.eup %3051 }
 0x37f   : > { %3061 = vpow2.f32 %v2043_v57  ;;  %v1965_v38 = vsub.f32 %v3716_v62, %v1864_v12  ;;  %v1866_v56 = vpop.xlane.xlu1 %1865 }
 0x380   : > { %v1966_v5 = vsub.f32 %v3720_v1, %v1866_v56  ;;  %3063 = vpow2.f32 %v2045_v9 }
 0x381   : > { %v3955_v24 = vpop.eup %3053  ;;  %v2055_v60 = vmul.f32 1.442695, %v1965_v38  ;;  %2169 = vadd.xlane.f32.xlu1 %v3952_v59 }
 0x382   : > { %v2057_v11 = vmul.f32 1.442695, %v1966_v5  ;;  %2163 = vadd.xlane.f32.xlu0 %v3955_v24  ;;  %v1860_v47 = vpop.xlane.xlu0 %1859  ;;  %v3960_v62 = vpop.eup %3055 }
 0x383   : > { %3065 = vpow2.f32 %v2055_v60  ;;  %v1963_v23 = vsub.f32 %v3725_v3, %v1860_v47  ;;  %v1862_v27 = vpop.xlane.xlu1 %1861 }
 0x384   : > { %v1964_v36 = vsub.f32 %v3728_v4, %v1862_v27  ;;  %3067 = vpow2.f32 %v2057_v11 }
 0x385   : > { %v3963_v30 = vpop.eup %3057  ;;  %v2051_v1 = vmul.f32 1.442695, %v1963_v23  ;;  %2165 = vadd.xlane.f32.xlu1 %v3960_v62 }
 0x386   : > { %v2053_v52 = vmul.f32 1.442695, %v1964_v36  ;;  %2175 = vadd.xlane.f32.xlu0 %v3963_v30  ;;  %v1872_v16 = vpop.xlane.xlu0 %1871  ;;  %v3968_v3 = vpop.eup %3059 }
 0x387   : > { %3069 = vpow2.f32 %v2051_v1  ;;  %v1969_v39 = vsub.f32 %v3732_v6, %v1872_v16  ;;  %v1874_v33 = vpop.xlane.xlu1 %1873 }
 0x388   : > { %v1970_v10 = vsub.f32 %v3736_v13, %v1874_v33  ;;  %3071 = vpow2.f32 %v2053_v52 }
 0x389   : > { %v3971_v18 = vpop.eup %3061  ;;  %v2063_v4 = vmul.f32 1.442695, %v1969_v39  ;;  %2177 = vadd.xlane.f32.xlu1 %v3968_v3 }
 0x38a   : > { %v2065_v57 = vmul.f32 1.442695, %v1970_v10  ;;  %2171 = vadd.xlane.f32.xlu0 %v3971_v18  ;;  %v1868_v9 = vpop.xlane.xlu0 %1867  ;;  %v3976_v6 = vpop.eup %3063 }
 0x38b   : > { %3073 = vpow2.f32 %v2063_v4  ;;  %v1967_v12 = vsub.f32 %v3741_v17, %v1868_v9  ;;  %v1870_v38 = vpop.xlane.xlu1 %1869 }
 0x38c   : > { %v1968_v56 = vsub.f32 %v3744_v19, %v1870_v38  ;;  %3075 = vpow2.f32 %v2065_v57 }
 0x38d   : > { %v3979_v5 = vpop.eup %3065  ;;  %v2059_v13 = vmul.f32 1.442695, %v1967_v12  ;;  %2173 = vadd.xlane.f32.xlu1 %v3976_v6 }
 0x38e   : > { %v2061_v60 = vmul.f32 1.442695, %v1968_v56  ;;  %2183 = vadd.xlane.f32.xlu0 %v3979_v5  ;;  %v1880_v11 = vpop.xlane.xlu0 %1879  ;;  %v3984_v17 = vpop.eup %3067 }
 0x38f   : > { %3077 = vpow2.f32 %v2059_v13  ;;  %v1973_v47 = vsub.f32 %v3748_v22, %v1880_v11  ;;  %v1882_v23 = vpop.xlane.xlu1 %1881 }
 0x390   : > { %v1974_v27 = vsub.f32 %v3752_v28, %v1882_v23  ;;  %3079 = vpow2.f32 %v2061_v60 }
 0x391   : > { %v3987_v36 = vpop.eup %3069  ;;  %v2071_v19 = vmul.f32 1.442695, %v1973_v47  ;;  %2185 = vadd.xlane.f32.xlu1 %v3984_v17 }
 0x392   : > { %v2073_v1 = vmul.f32 1.442695, %v1974_v27  ;;  %2179 = vadd.xlane.f32.xlu0 %v3987_v36  ;;  %v1876_v52 = vpop.xlane.xlu0 %1875  ;;  %v3992_v22 = vpop.eup %3071 }
 0x393   : > { %3081 = vpow2.f32 %v2071_v19  ;;  %v1971_v16 = vsub.f32 %v3757_v31, %v1876_v52  ;;  %v1878_v39 = vpop.xlane.xlu1 %1877 }
 0x394   : > { %v1972_v33 = vsub.f32 %v3760_v34, %v1878_v39  ;;  %3083 = vpow2.f32 %v2073_v1 }
 0x395   : > { %v3995_v10 = vpop.eup %3073  ;;  %v2067_v28 = vmul.f32 1.442695, %v1971_v16  ;;  %2181 = vadd.xlane.f32.xlu1 %v3992_v22 }
 0x396   : > { %v2069_v4 = vmul.f32 1.442695, %v1972_v33  ;;  %2191 = vadd.xlane.f32.xlu0 %v3995_v10  ;;  %v1888_v57 = vpop.xlane.xlu0 %1887  ;;  %v4000_v31 = vpop.eup %3075 }
 0x397   : > { %3085 = vpow2.f32 %v2067_v28  ;;  %v1977_v9 = vsub.f32 %v3764_v37, %v1888_v57  ;;  %v1890_v12 = vpop.xlane.xlu1 %1889 }
 0x398   : > { %v1978_v38 = vsub.f32 %v3768_v51, %v1890_v12  ;;  %3087 = vpow2.f32 %v2069_v4 }
 0x399   : > { %v4003_v56 = vpop.eup %3077  ;;  %v2079_v34 = vmul.f32 1.442695, %v1977_v9  ;;  %2193 = vadd.xlane.f32.xlu1 %v4000_v31 }
 0x39a   : > { %v2081_v13 = vmul.f32 1.442695, %v1978_v38  ;;  %2187 = vadd.xlane.f32.xlu0 %v4003_v56  ;;  %v1884_v60 = vpop.xlane.xlu0 %1883  ;;  %v4008_v37 = vpop.eup %3079 }
 0x39b   : > { %3089 = vpow2.f32 %v2079_v34  ;;  %v1975_v11 = vsub.f32 %v3773_v42, %v1884_v60  ;;  %v1886_v47 = vpop.xlane.xlu1 %1885 }
 0x39c   : > { %v1976_v23 = vsub.f32 %v3776_v14, %v1886_v47  ;;  %3091 = vpow2.f32 %v2081_v13 }
 0x39d   : > { %v4011_v27 = vpop.eup %3081  ;;  %v2075_v51 = vmul.f32 1.442695, %v1975_v11  ;;  %2189 = vadd.xlane.f32.xlu1 %v4008_v37 }
 0x39e   : > { %v2077_v19 = vmul.f32 1.442695, %v1976_v23  ;;  %2199 = vadd.xlane.f32.xlu0 %v4011_v27  ;;  %v1896_v1 = vpop.xlane.xlu0 %1895  ;;  %v4016_v42 = vpop.eup %3083 }
 0x39f   : > { %3093 = vpow2.f32 %v2075_v51  ;;  %v1981_v52 = vsub.f32 %v3780_v7, %v1896_v1  ;;  %v1898_v16 = vpop.xlane.xlu1 %1897 }
 0x3a0   : > { %v1982_v39 = vsub.f32 %v3784_v55, %v1898_v16  ;;  %3095 = vpow2.f32 %v2077_v19 }
 0x3a1   : > { %v4019_v33 = vpop.eup %3085  ;;  %v2087_v14 = vmul.f32 1.442695, %v1981_v52  ;;  %2201 = vadd.xlane.f32.xlu1 %v4016_v42 }
 0x3a2   : > { %v2089_v28 = vmul.f32 1.442695, %v1982_v39  ;;  %2195 = vadd.xlane.f32.xlu0 %v4019_v33  ;;  %v1892_v4 = vpop.xlane.xlu0 %1891  ;;  %v4024_v7 = vpop.eup %3087 }
 0x3a3   : > { %3097 = vpow2.f32 %v2087_v14  ;;  %v1979_v57 = vsub.f32 %v3789_v58, %v1892_v4  ;;  %v1894_v9 = vpop.xlane.xlu1 %1893 }
 0x3a4   : > { %v1980_v12 = vsub.f32 %v3792_v61, %v1894_v9  ;;  %3099 = vpow2.f32 %v2089_v28 }
 0x3a5   : > { %v4027_v38 = vpop.eup %3089  ;;  %v2083_v55 = vmul.f32 1.442695, %v1979_v57  ;;  %2197 = vadd.xlane.f32.xlu1 %v4024_v7 }
 0x3a6   : > { %v2085_v34 = vmul.f32 1.442695, %v1980_v12  ;;  %2207 = vadd.xlane.f32.xlu0 %v4027_v38  ;;  %v1904_v13 = vpop.xlane.xlu0 %1903  ;;  %v4032_v58 = vpop.eup %3091 }
 0x3a7   : > { %3101 = vpow2.f32 %v2083_v55  ;;  %v1985_v60 = vsub.f32 %v3796_v0, %v1904_v13  ;;  %v1906_v11 = vpop.xlane.xlu1 %1905  ;;  %v4315_v13 = vld [vmem:[#allocation2_spill] sm:$0xff] }
 0x3a8   : > { %v1986_v47 = vsub.f32 %v3800_v8, %v1906_v11  ;;  %3103 = vpow2.f32 %v2085_v34 }
 0x3a9   : > { %v4035_v23 = vpop.eup %3093  ;;  %v2095_v61 = vmul.f32 1.442695, %v1985_v60  ;;  %2209 = vadd.xlane.f32.xlu1 %v4032_v58 }
 0x3aa   : > { %v2097_v51 = vmul.f32 1.442695, %v1986_v47  ;;  %2203 = vadd.xlane.f32.xlu0 %v4035_v23  ;;  %v1900_v19 = vpop.xlane.xlu0 %1899  ;;  %v4040_v0 = vpop.eup %3095  ;;  %v4316_v47 = vld [vmem:[#allocation3_spill] sm:$0xff] }
 0x3ab   : > { %3105 = vpow2.f32 %v2095_v61  ;;  %v1983_v1 = vsub.f32 %v3805_v15, %v1900_v19  ;;  %v1902_v52 = vpop.xlane.xlu1 %1901 }
 0x3ac   : > { %v1984_v16 = vsub.f32 %v3808_v21, %v1902_v52  ;;  %3107 = vpow2.f32 %v2097_v51  ;;  %v4317_v52 = vld [vmem:[#allocation4_spill] sm:$0xff] }
 0x3ad   : > { %v4043_v39 = vpop.eup %3097  ;;  %v2091_v8 = vmul.f32 1.442695, %v1983_v1  ;;  %2205 = vadd.xlane.f32.xlu1 %v4040_v0 }
 0x3ae   : > { %v2093_v14 = vmul.f32 1.442695, %v1984_v16  ;;  %2215 = vadd.xlane.f32.xlu0 %v4043_v39  ;;  %v1912_v28 = vpop.xlane.xlu0 %1911  ;;  %v4048_v15 = vpop.eup %3099 }
 0x3af   : > { %3109 = vpow2.f32 %v2091_v8  ;;  %v1989_v4 = vsub.f32 %v3812_v26, %v1912_v28  ;;  %v1914_v57 = vpop.xlane.xlu1 %1913  ;;  %v4318_v28 = vld [vmem:[#allocation5_spill] sm:$0xff] }
 0x3b0   : > { %v1990_v9 = vsub.f32 %v3816_v41, %v1914_v57  ;;  %3111 = vpow2.f32 %v2093_v14 }
 0x3b1   : > { %v4051_v12 = vpop.eup %3101  ;;  %v2103_v21 = vmul.f32 1.442695, %v1989_v4  ;;  %2217 = vadd.xlane.f32.xlu1 %v4048_v15 }
 0x3b2   : > { %v2105_v55 = vmul.f32 1.442695, %v1990_v9  ;;  %2211 = vadd.xlane.f32.xlu0 %v4051_v12  ;;  %v1908_v34 = vpop.xlane.xlu0 %1907  ;;  %v4056_v26 = vpop.eup %3103 }
 0x3b3   : > { %3113 = vpow2.f32 %v2103_v21  ;;  %v1987_v60 = vsub.f32 %v4315_v13, %v1908_v34  ;;  %v1910_v11 = vpop.xlane.xlu1 %1909  ;;  %v4320_v34 = vld [vmem:[#allocation6_spill] sm:$0xff] }
 0x3b4   : > { %v1988_v61 = vsub.f32 %v4316_v47, %v1910_v11  ;;  %3115 = vpow2.f32 %v2105_v55  ;;  %v4322_v47 = vld [vmem:[#allocation7_spill] sm:$0xff] }
 0x3b5   : > { %v4059_v51 = vpop.eup %3105  ;;  %v2099_v41 = vmul.f32 1.442695, %v1987_v60  ;;  %2213 = vadd.xlane.f32.xlu1 %v4056_v26 }
 0x3b6   : > { %v2101_v19 = vmul.f32 1.442695, %v1988_v61  ;;  %2223 = vadd.xlane.f32.xlu0 %v4059_v51  ;;  %v1920_v1 = vpop.xlane.xlu0 %1919  ;;  %v4064_v14 = vpop.eup %3107 }
 0x3b7   : > { %3117 = vpow2.f32 %v2099_v41  ;;  %v1993_v16 = vsub.f32 %v4317_v52, %v1920_v1  ;;  %v1922_v8 = vpop.xlane.xlu1 %1921 }
 0x3b8   : > { %v1994_v4 = vsub.f32 %v4318_v28, %v1922_v8  ;;  %3119 = vpow2.f32 %v2101_v19 }
 0x3b9   : > { %v4067_v57 = vpop.eup %3109  ;;  %v2111_v9 = vmul.f32 1.442695, %v1993_v16  ;;  %2225 = vadd.xlane.f32.xlu1 %v4064_v14  ;;  %v4324_v16 = vld [vmem:[#allocation8_spill] sm:$0xff] }
 0x3ba   : > { %4319 = vst [vmem:[#allocation2_spill] sm:$0xff] %v4067_v57  ;;  %v2113_v21 = vmul.f32 1.442695, %v1994_v4  ;;  %2219 = vadd.xlane.f32.xlu0 %v4067_v57  ;;  %v1916_v55 = vpop.xlane.xlu0 %1915  ;;  %v4072_v11 = vpop.eup %3111 }
 0x3bb   : > { %3121 = vpow2.f32 %v2111_v9  ;;  %v1991_v13 = vsub.f32 %v4320_v34, %v1916_v55  ;;  %v1918_v60 = vpop.xlane.xlu1 %1917  ;;  %4321 = vst [vmem:[#allocation3_spill] sm:$0xff] %v4072_v11  ;;  %v4326_v9 = vld [vmem:[#allocation9_spill] sm:$0xff] }
 0x3bc   : > { %v1992_v61 = vsub.f32 %v4322_v47, %v1918_v60  ;;  %3123 = vpow2.f32 %v2113_v21  ;;  %v4328_v47 = vld [vmem:[#allocation10_spill] sm:$0xff] }
 0x3bd   : > { %v4075_v41 = vpop.eup %3113  ;;  %v2107_v1 = vmul.f32 1.442695, %v1991_v13  ;;  %2221 = vadd.xlane.f32.xlu1 %v4072_v11 }
 0x3be   : > { %4323 = vst [vmem:[#allocation4_spill] sm:$0xff] %v4075_v41  ;;  %v2109_v52 = vmul.f32 1.442695, %v1992_v61  ;;  %2231 = vadd.xlane.f32.xlu0 %v4075_v41  ;;  %v1928_v19 = vpop.xlane.xlu0 %1927  ;;  %v4080_v4 = vpop.eup %3115 }
 0x3bf   : > { %3125 = vpow2.f32 %v2107_v1  ;;  %v1997_v8 = vsub.f32 %v4324_v16, %v1928_v19  ;;  %v1930_v28 = vpop.xlane.xlu1 %1929  ;;  %4325 = vst [vmem:[#allocation5_spill] sm:$0xff] %v4080_v4  ;;  %v4330_v16 = vld [vmem:[#allocation11_spill] sm:$0xff] }
 0x3c0   : > { %v1998_v55 = vsub.f32 %v4326_v9, %v1930_v28  ;;  %3127 = vpow2.f32 %v2109_v52 }
 0x3c1   : > { %v4083_v34 = vpop.eup %3117  ;;  %v2119_v60 = vmul.f32 1.442695, %v1997_v8  ;;  %2233 = vadd.xlane.f32.xlu1 %v4080_v4 }
 0x3c2   : > { %4327 = vst [vmem:[#allocation6_spill] sm:$0xff] %v4083_v34  ;;  %v2121_v13 = vmul.f32 1.442695, %v1998_v55  ;;  %2227 = vadd.xlane.f32.xlu0 %v4083_v34  ;;  %v1924_v21 = vpop.xlane.xlu0 %1923  ;;  %v4088_v19 = vpop.eup %3119 }
 0x3c3   : > { %3129 = vpow2.f32 %v2119_v60  ;;  %v1995_v61 = vsub.f32 %v4328_v47, %v1924_v21  ;;  %v1926_v1 = vpop.xlane.xlu1 %1925  ;;  %4329 = vst [vmem:[#allocation7_spill] sm:$0xff] %v4088_v19  ;;  %v4333_v47 = vld [vmem:[#allocation12_spill] sm:$0xff] }
 0x3c4   : > { %v1996_v41 = vsub.f32 %v4330_v16, %v1926_v1  ;;  %3131 = vpow2.f32 %v2121_v13  ;;  %v4334_v1 = vld [vmem:[#allocation14_spill] sm:$0xff] }
 0x3c5   : > { %v4091_v11 = vpop.eup %3121  ;;  %v2115_v28 = vmul.f32 1.442695, %v1995_v61  ;;  %2229 = vadd.xlane.f32.xlu1 %v4088_v19  ;;  %v4336_v19 = vld [vmem:[#allocation15_spill] sm:$0xff] }
 0x3c6   : > { %4331 = vst [vmem:[#allocation8_spill] sm:$0xff] %v4091_v11  ;;  %v2117_v8 = vmul.f32 1.442695, %v1996_v41  ;;  %2239 = vadd.xlane.f32.xlu0 %v4091_v11  ;;  %v1936_v52 = vpop.xlane.xlu0 %1935  ;;  %v4095_v55 = vpop.eup %3123  ;;  %v4335_v11 = vld [vmem:[#allocation13_spill] sm:$0xff] }
 0x3c7   : > { %3133 = vpow2.f32 %v2115_v28  ;;  %v1938_v9 = vpop.xlane.xlu1 %1937  ;;  %v2001_v61 = vsub.f32 %v4333_v47, %v1936_v52 }
 0x3c8   : > { %3135 = vpow2.f32 %v2117_v8  ;;  %v2002_v28 = vsub.f32 %v4335_v11, %v1938_v9 }
 0x3c9   : > { %v4097_v60 = vpop.eup %3125  ;;  %2241 = vadd.xlane.f32.xlu1 %v4095_v55 }
 0x3ca   : > { %4332 = vst [vmem:[#allocation9_spill] sm:$0xff] %v4097_v60  ;;  %2235 = vadd.xlane.f32.xlu0 %v4097_v60  ;;  %v1932_v21 = vpop.xlane.xlu0 %1931  ;;  %v4103_v16 = vpop.eup %3127  ;;  %v2127_v60 = vmul.f32 1.442695, %v2001_v61 }
 0x3cb   : > { %v1999_v13 = vsub.f32 %v4334_v1, %v1932_v21  ;;  %v1934_v41 = vpop.xlane.xlu1 %1933  ;;  %v2129_v21 = vmul.f32 1.442695, %v2002_v28 }
 0x3cc   : > { %v2000_v34 = vsub.f32 %v4336_v19, %v1934_v41 }
 0x3cd   : > { %v4107_v4 = vpop.eup %3129  ;;  %v2123_v57 = vmul.f32 1.442695, %v1999_v13  ;;  %2237 = vadd.xlane.f32.xlu1 %v4103_v16 }
 0x3ce   : > { %v2125_v8 = vmul.f32 1.442695, %v2000_v34  ;;  %2247 = vadd.xlane.f32.xlu0 %v4107_v4  ;;  %v4111_v52 = vpop.eup %3131 }
 0x3cf   : > { %3137 = vpow2.f32 %v2123_v57 }
 0x3d0   : > { %3139 = vpow2.f32 %v2125_v8 }
 0x3d1   : > { %v4113_v47 = vpop.eup %3133  ;;  %2249 = vadd.xlane.f32.xlu1 %v4111_v52  ;;  %3141 = vpow2.f32 %v2127_v60 }
 0x3d2   : > { %2243 = vadd.xlane.f32.xlu0 %v4113_v47  ;;  %v4117_v11 = vpop.eup %3135  ;;  %3143 = vpow2.f32 %v2129_v21 }
 0x3d5   : > { %2245 = vadd.xlane.f32.xlu1 %v4117_v11 }
 0x3d9   : > { %v4120_v34 = vpop.eup %3137 }
 0x3da   : > { %v4122_v57 = vpop.eup %3139  ;;  %2251 = vadd.xlane.f32.xlu0 %v4120_v34 }
 0x3db   : > { %2253 = vadd.xlane.f32.xlu1 %v4122_v57  ;;  %v4126_v19 = vpop.eup %3141 }
 0x3dc   : > { %4337 = vst [vmem:[#allocation10_spill] sm:$0xff] %v4126_v19  ;;  %v4128_v9 = vpop.eup %3143 }
 0x3dd   : > { %4338 = vst [vmem:[#allocation11_spill] sm:$0xff] %v4128_v9 }
 0x3de   : > { %2255 = vadd.xlane.f32.xlu0 %v4126_v19 }
 0x3df   : > { %2257 = vadd.xlane.f32.xlu1 %v4128_v9 }
 0x3ea   : > { %v2136_v60 = vpop.xlane.xlu0 %2135 }
 0x3eb   : > { %3145 = vrcp.f32 %v2136_v60 }
 0x3ee   : > { %v2138_v61 = vpop.xlane.xlu1 %2137  ;;  %v2132_v1 = vpop.xlane.xlu0 %2131 }
 0x3ef   : > { %3147 = vrcp.f32 %v2138_v61 }
 0x3f0   : > { %3149 = vrcp.f32 %v2132_v1 }
 0x3f2   : > { %v2134_v13 = vpop.xlane.xlu1 %2133 }
 0x3f3   : > { %3151 = vrcp.f32 %v2134_v13  ;;  %v2144_v41 = vpop.xlane.xlu0 %2143 }
 0x3f4   : > { %3153 = vrcp.f32 %v2144_v41 }
 0x3f5   : > { %v3146_v28 = vpop.eup %3145 }
 0x3f6   : > { %v2325_v8 = vmul.f32 %v3146_v28, %v3883_v53  ;;  %v2146_v21 = vpop.xlane.xlu1 %2145 }
 0x3f7   : > { %3155 = vrcp.f32 %v2146_v21  ;;  %v2140_v60 = vpop.xlane.xlu0 %2139 }
 0x3f8   : > { %2389 = vst [vmem:[%s4136_s23 + $0x10] sm:$0xff] %v2325_v8  ;;  %3157 = vrcp.f32 %v2140_v60 }
 0x3f9   : > { %v3148_v61 = vpop.eup %3147 }
 0x3fa   : > { %v3150_v1 = vpop.eup %3149  ;;  %v2326_v13 = vmul.f32 %v3148_v61, %v3890_v2  ;;  %v2142_v41 = vpop.xlane.xlu1 %2141 }
 0x3fb   : > { %v2323_v9 = vmul.f32 %v3150_v1, %v3887_v49  ;;  %3159 = vrcp.f32 %v2142_v41  ;;  %v2152_v19 = vpop.xlane.xlu0 %2151 }
 0x3fc   : > { %2390 = vst [vmem:[%s4136_s23 + $0x18] sm:$0xff] %v2326_v13  ;;  %3161 = vrcp.f32 %v2152_v19 }
 0x3fd   : > { %v3152_v53 = vpop.eup %3151  ;;  %2387 = vst [vmem:[%s4136_s23] sm:$0xff] %v2323_v9 }
 0x3fe   : > { %v3154_v28 = vpop.eup %3153  ;;  %v2324_v8 = vmul.f32 %v3152_v53, %v3896_v20  ;;  %v2154_v21 = vpop.xlane.xlu1 %2153 }
 0x3ff   : > { %v2329_v60 = vmul.f32 %v3154_v28, %v3899_v29  ;;  %3163 = vrcp.f32 %v2154_v21  ;;  %v2148_v2 = vpop.xlane.xlu0 %2147 }
 0x400   : > { %2388 = vst [vmem:[%s4136_s23 + $0x8] sm:$0xff] %v2324_v8  ;;  %3165 = vrcp.f32 %v2148_v2 }
 0x401   : > { %v3156_v49 = vpop.eup %3155  ;;  %2393 = vst [vmem:[%s4136_s23 + $0x30] sm:$0xff] %v2329_v60 }
 0x402   : > { %v3158_v61 = vpop.eup %3157  ;;  %v2330_v19 = vmul.f32 %v3156_v49, %v3904_v43  ;;  %v2150_v1 = vpop.xlane.xlu1 %2149 }
 0x403   : > { %v2327_v9 = vmul.f32 %v3158_v61, %v3907_v25  ;;  %3167 = vrcp.f32 %v2150_v1  ;;  %v2160_v20 = vpop.xlane.xlu0 %2159 }
 0x404   : > { %2394 = vst [vmem:[%s4136_s23 + $0x38] sm:$0xff] %v2330_v19  ;;  %3169 = vrcp.f32 %v2160_v20 }
 0x405   : > { %v3160_v29 = vpop.eup %3159  ;;  %2391 = vst [vmem:[%s4136_s23 + $0x20] sm:$0xff] %v2327_v9 }
 0x406   : > { %v3162_v13 = vpop.eup %3161  ;;  %v2328_v41 = vmul.f32 %v3160_v29, %v3912_v50  ;;  %v2162_v53 = vpop.xlane.xlu1 %2161 }
 0x407   : > { %v2333_v28 = vmul.f32 %v3162_v13, %v3915_v32  ;;  %3171 = vrcp.f32 %v2162_v53  ;;  %v2156_v43 = vpop.xlane.xlu0 %2155 }
 0x408   : > { %2392 = vst [vmem:[%s4136_s23 + $0x28] sm:$0xff] %v2328_v41  ;;  %3173 = vrcp.f32 %v2156_v43 }
 0x409   : > { %v3164_v25 = vpop.eup %3163  ;;  %2397 = vst [vmem:[%s4136_s23 + $0x50] sm:$0xff] %v2333_v28 }
 0x40a   : > { %v3166_v8 = vpop.eup %3165  ;;  %v2334_v21 = vmul.f32 %v3164_v25, %v3920_v46  ;;  %v2158_v60 = vpop.xlane.xlu1 %2157 }
 0x40b   : > { %v2331_v2 = vmul.f32 %v3166_v8, %v3923_v35  ;;  %3175 = vrcp.f32 %v2158_v60  ;;  %v2168_v50 = vpop.xlane.xlu0 %2167 }
 0x40c   : > { %2398 = vst [vmem:[%s4136_s23 + $0x58] sm:$0xff] %v2334_v21  ;;  %3177 = vrcp.f32 %v2168_v50 }
 0x40d   : > { %v3168_v32 = vpop.eup %3167  ;;  %2395 = vst [vmem:[%s4136_s23 + $0x40] sm:$0xff] %v2331_v2 }
 0x40e   : > { %v3170_v49 = vpop.eup %3169  ;;  %v2332_v61 = vmul.f32 %v3168_v32, %v3928_v40  ;;  %v2170_v19 = vpop.xlane.xlu1 %2169 }
 0x40f   : > { %v2337_v1 = vmul.f32 %v3170_v49, %v3931_v44  ;;  %3179 = vrcp.f32 %v2170_v19  ;;  %v2164_v46 = vpop.xlane.xlu0 %2163 }
 0x410   : > { %2396 = vst [vmem:[%s4136_s23 + $0x48] sm:$0xff] %v2332_v61  ;;  %3181 = vrcp.f32 %v2164_v46 }
 0x411   : > { %v3172_v35 = vpop.eup %3171  ;;  %2401 = vst [vmem:[%s4136_s23 + $0x70] sm:$0xff] %v2337_v1 }
 0x412   : > { %v3174_v9 = vpop.eup %3173  ;;  %v2338_v20 = vmul.f32 %v3172_v35, %v3936_v45  ;;  %v2166_v29 = vpop.xlane.xlu1 %2165 }
 0x413   : > { %v2335_v13 = vmul.f32 %v3174_v9, %v3939_v48  ;;  %3183 = vrcp.f32 %v2166_v29  ;;  %v2176_v40 = vpop.xlane.xlu0 %2175 }
 0x414   : > { %2402 = vst [vmem:[%s4136_s23 + $0x78] sm:$0xff] %v2338_v20  ;;  %3185 = vrcp.f32 %v2176_v40 }
 0x415   : > { %v3176_v44 = vpop.eup %3175  ;;  %2399 = vst [vmem:[%s4136_s23 + $0x60] sm:$0xff] %v2335_v13 }
 0x416   : > { %v3178_v41 = vpop.eup %3177  ;;  %v2336_v53 = vmul.f32 %v3176_v44, %v3944_v54  ;;  %v2178_v28 = vpop.xlane.xlu1 %2177 }
 0x417   : > { %v2341_v43 = vmul.f32 %v3178_v41, %v3947_v63  ;;  %3187 = vrcp.f32 %v2178_v28  ;;  %v2172_v45 = vpop.xlane.xlu0 %2171 }
 0x418   : > { %2400 = vst [vmem:[%s4136_s23 + $0x68] sm:$0xff] %v2336_v53  ;;  %3189 = vrcp.f32 %v2172_v45 }
 0x419   : > { %v3180_v48 = vpop.eup %3179  ;;  %2405 = vst [vmem:[%s4136_s23 + $0x90] sm:$0xff] %v2341_v43 }
 0x41a   : > { %v3182_v25 = vpop.eup %3181  ;;  %v2342_v8 = vmul.f32 %v3180_v48, %v3952_v59  ;;  %v2174_v21 = vpop.xlane.xlu1 %2173 }
 0x41b   : > { %v2339_v60 = vmul.f32 %v3182_v25, %v3955_v24  ;;  %3191 = vrcp.f32 %v2174_v21  ;;  %v2184_v54 = vpop.xlane.xlu0 %2183 }
 0x41c   : > { %2406 = vst [vmem:[%s4136_s23 + $0x98] sm:$0xff] %v2342_v8  ;;  %3193 = vrcp.f32 %v2184_v54 }
 0x41d   : > { %v3184_v63 = vpop.eup %3183  ;;  %2403 = vst [vmem:[%s4136_s23 + $0x80] sm:$0xff] %v2339_v60 }
 0x41e   : > { %v3186_v2 = vpop.eup %3185  ;;  %v2340_v50 = vmul.f32 %v3184_v63, %v3960_v62  ;;  %v2186_v32 = vpop.xlane.xlu1 %2185 }
 0x41f   : > { %v2345_v49 = vmul.f32 %v3186_v2, %v3963_v30  ;;  %3195 = vrcp.f32 %v2186_v32  ;;  %v2180_v59 = vpop.xlane.xlu0 %2179 }
 0x420   : > { %2404 = vst [vmem:[%s4136_s23 + $0x88] sm:$0xff] %v2340_v50  ;;  %3197 = vrcp.f32 %v2180_v59 }
 0x421   : > { %v3188_v24 = vpop.eup %3187  ;;  %2409 = vst [vmem:[%s4136_s23 + $0xb0] sm:$0xff] %v2345_v49 }
 0x422   : > { %v3190_v61 = vpop.eup %3189  ;;  %v2346_v19 = vmul.f32 %v3188_v24, %v3968_v3  ;;  %v2182_v1 = vpop.xlane.xlu1 %2181 }
 0x423   : > { %v2343_v46 = vmul.f32 %v3190_v61, %v3971_v18  ;;  %3199 = vrcp.f32 %v2182_v1  ;;  %v2192_v62 = vpop.xlane.xlu0 %2191 }
 0x424   : > { %2410 = vst [vmem:[%s4136_s23 + $0xb8] sm:$0xff] %v2346_v19  ;;  %3201 = vrcp.f32 %v2192_v62 }
 0x425   : > { %v3192_v30 = vpop.eup %3191  ;;  %2407 = vst [vmem:[%s4136_s23 + $0xa0] sm:$0xff] %v2343_v46 }
 0x426   : > { %v3194_v35 = vpop.eup %3193  ;;  %v2344_v9 = vmul.f32 %v3192_v30, %v3976_v6  ;;  %v2194_v20 = vpop.xlane.xlu1 %2193 }
 0x427   : > { %v2349_v29 = vmul.f32 %v3194_v35, %v3979_v5  ;;  %3203 = vrcp.f32 %v2194_v20  ;;  %v2188_v3 = vpop.xlane.xlu0 %2187 }
 0x428   : > { %2408 = vst [vmem:[%s4136_s23 + $0xa8] sm:$0xff] %v2344_v9  ;;  %3205 = vrcp.f32 %v2188_v3 }
 0x429   : > { %v3196_v18 = vpop.eup %3195  ;;  %2413 = vst [vmem:[%s4136_s23 + $0xd0] sm:$0xff] %v2349_v29 }
 0x42a   : > { %v3198_v13 = vpop.eup %3197  ;;  %v2350_v40 = vmul.f32 %v3196_v18, %v3984_v17  ;;  %v2190_v44 = vpop.xlane.xlu1 %2189 }
 0x42b   : > { %v2347_v41 = vmul.f32 %v3198_v13, %v3987_v36  ;;  %3207 = vrcp.f32 %v2190_v44  ;;  %v2200_v6 = vpop.xlane.xlu0 %2199 }
 0x42c   : > { %2414 = vst [vmem:[%s4136_s23 + $0xd8] sm:$0xff] %v2350_v40  ;;  %3209 = vrcp.f32 %v2200_v6 }
 0x42d   : > { %v3200_v5 = vpop.eup %3199  ;;  %2411 = vst [vmem:[%s4136_s23 + $0xc0] sm:$0xff] %v2347_v41 }
 0x42e   : > { %v3202_v53 = vpop.eup %3201  ;;  %v2348_v28 = vmul.f32 %v3200_v5, %v3992_v22  ;;  %v2202_v43 = vpop.xlane.xlu1 %2201 }
 0x42f   : > { %v2353_v45 = vmul.f32 %v3202_v53, %v3995_v10  ;;  %3211 = vrcp.f32 %v2202_v43  ;;  %v2196_v17 = vpop.xlane.xlu0 %2195 }
 0x430   : > { %2412 = vst [vmem:[%s4136_s23 + $0xc8] sm:$0xff] %v2348_v28  ;;  %3213 = vrcp.f32 %v2196_v17  ;;  %v4339_v17 = vld [vmem:[#allocation2_spill] sm:$0xff] }
 0x431   : > { %v3204_v36 = vpop.eup %3203  ;;  %2417 = vst [vmem:[%s4136_s23 + $0xf0] sm:$0xff] %v2353_v45 }
 0x432   : > { %v3206_v48 = vpop.eup %3205  ;;  %v2354_v25 = vmul.f32 %v3204_v36, %v4000_v31  ;;  %v2198_v8 = vpop.xlane.xlu1 %2197 }
 0x433   : > { %v2351_v21 = vmul.f32 %v3206_v48, %v4003_v56  ;;  %3215 = vrcp.f32 %v2198_v8  ;;  %v2208_v22 = vpop.xlane.xlu0 %2207 }
 0x434   : > { %2418 = vst [vmem:[%s4136_s23 + $0xf8] sm:$0xff] %v2354_v25  ;;  %3217 = vrcp.f32 %v2208_v22  ;;  %v4340_v25 = vld [vmem:[#allocation3_spill] sm:$0xff]  ;;  %v4341_v22 = vld [vmem:[#allocation4_spill] sm:$0xff] }
 0x435   : > { %v3208_v10 = vpop.eup %3207  ;;  %2415 = vst [vmem:[%s4136_s23 + $0xe0] sm:$0xff] %v2351_v21 }
 0x436   : > { %v3210_v60 = vpop.eup %3209  ;;  %v2352_v54 = vmul.f32 %v3208_v10, %v4008_v37  ;;  %v2210_v63 = vpop.xlane.xlu1 %2209 }
 0x437   : > { %v2357_v2 = vmul.f32 %v3210_v60, %v4011_v27  ;;  %3219 = vrcp.f32 %v2210_v63  ;;  %v2204_v31 = vpop.xlane.xlu0 %2203  ;;  %v4342_v63 = vld [vmem:[#allocation5_spill] sm:$0xff] }
 0x438   : > { %2416 = vst [vmem:[%s4136_s23 + $0xe8] sm:$0xff] %v2352_v54  ;;  %3221 = vrcp.f32 %v2204_v31 }
 0x439   : > { %v3212_v56 = vpop.eup %3211  ;;  %2421 = vst [vmem:[%s4136_s23 + $0x110] sm:$0xff] %v2357_v2 }
 0x43a   : > { %v3214_v50 = vpop.eup %3213  ;;  %v2358_v32 = vmul.f32 %v3212_v56, %v4016_v42  ;;  %v2206_v49 = vpop.xlane.xlu1 %2205  ;;  %v4343_v56 = vld [vmem:[#allocation6_spill] sm:$0xff] }
 0x43b   : > { %v2355_v59 = vmul.f32 %v3214_v50, %v4019_v33  ;;  %3223 = vrcp.f32 %v2206_v49  ;;  %v2216_v37 = vpop.xlane.xlu0 %2215 }
 0x43c   : > { %2422 = vst [vmem:[%s4136_s23 + $0x118] sm:$0xff] %v2358_v32  ;;  %3225 = vrcp.f32 %v2216_v37  ;;  %v4344_v37 = vld [vmem:[#allocation7_spill] sm:$0xff] }
 0x43d   : > { %v3216_v27 = vpop.eup %3215  ;;  %2419 = vst [vmem:[%s4136_s23 + $0x100] sm:$0xff] %v2355_v59 }
 0x43e   : > { %v3218_v24 = vpop.eup %3217  ;;  %v2356_v61 = vmul.f32 %v3216_v27, %v4024_v7  ;;  %v2218_v19 = vpop.xlane.xlu1 %2217 }
 0x43f   : > { %v2361_v1 = vmul.f32 %v3218_v24, %v4027_v38  ;;  %3227 = vrcp.f32 %v2218_v19  ;;  %v2212_v42 = vpop.xlane.xlu0 %2211 }
 0x440   : > { %2420 = vst [vmem:[%s4136_s23 + $0x108] sm:$0xff] %v2356_v61  ;;  %3229 = vrcp.f32 %v2212_v42  ;;  %v4345_v61 = vld [vmem:[#allocation8_spill] sm:$0xff] }
 0x441   : > { %v3220_v33 = vpop.eup %3219  ;;  %2425 = vst [vmem:[%s4136_s23 + $0x130] sm:$0xff] %v2361_v1 }
 0x442   : > { %v3222_v46 = vpop.eup %3221  ;;  %v2362_v62 = vmul.f32 %v3220_v33, %v4032_v58  ;;  %v2214_v30 = vpop.xlane.xlu1 %2213 }
 0x443   : > { %v2359_v35 = vmul.f32 %v3222_v46, %v4035_v23  ;;  %3231 = vrcp.f32 %v2214_v30  ;;  %v2224_v7 = vpop.xlane.xlu0 %2223  ;;  %v4346_v30 = vld [vmem:[#allocation9_spill] sm:$0xff] }
 0x444   : > { %2426 = vst [vmem:[%s4136_s23 + $0x138] sm:$0xff] %v2362_v62  ;;  %3233 = vrcp.f32 %v2224_v7 }
 0x445   : > { %v3224_v38 = vpop.eup %3223  ;;  %2423 = vst [vmem:[%s4136_s23 + $0x120] sm:$0xff] %v2359_v35 }
 0x446   : > { %v3226_v9 = vpop.eup %3225  ;;  %v2360_v20 = vmul.f32 %v3224_v38, %v4040_v0  ;;  %v2226_v29 = vpop.xlane.xlu1 %2225 }
 0x447   : > { %v2365_v3 = vmul.f32 %v3226_v9, %v4043_v39  ;;  %3235 = vrcp.f32 %v2226_v29  ;;  %v2220_v58 = vpop.xlane.xlu0 %2219 }
 0x448   : > { %2424 = vst [vmem:[%s4136_s23 + $0x128] sm:$0xff] %v2360_v20  ;;  %3237 = vrcp.f32 %v2220_v58 }
 0x449   : > { %v3228_v23 = vpop.eup %3227  ;;  %2429 = vst [vmem:[%s4136_s23 + $0x150] sm:$0xff] %v2365_v3 }
 0x44a   : > { %v3230_v18 = vpop.eup %3229  ;;  %v2366_v13 = vmul.f32 %v3228_v23, %v4048_v15  ;;  %v2222_v40 = vpop.xlane.xlu1 %2221 }
 0x44b   : > { %v2363_v44 = vmul.f32 %v3230_v18, %v4051_v12  ;;  %3239 = vrcp.f32 %v2222_v40  ;;  %v2232_v0 = vpop.xlane.xlu0 %2231 }
 0x44c   : > { %2430 = vst [vmem:[%s4136_s23 + $0x158] sm:$0xff] %v2366_v13  ;;  %3241 = vrcp.f32 %v2232_v0 }
 0x44d   : > { %v3232_v39 = vpop.eup %3231  ;;  %2427 = vst [vmem:[%s4136_s23 + $0x140] sm:$0xff] %v2363_v44 }
 0x44e   : > { %v3234_v41 = vpop.eup %3233  ;;  %v2364_v6 = vmul.f32 %v3232_v39, %v4056_v26  ;;  %v2234_v5 = vpop.xlane.xlu1 %2233 }
 0x44f   : > { %v2369_v53 = vmul.f32 %v3234_v41, %v4059_v51  ;;  %3243 = vrcp.f32 %v2234_v5  ;;  %v2228_v15 = vpop.xlane.xlu0 %2227 }
 0x450   : > { %2428 = vst [vmem:[%s4136_s23 + $0x148] sm:$0xff] %v2364_v6  ;;  %3245 = vrcp.f32 %v2228_v15  ;;  %v4347_v6 = vld [vmem:[#allocation10_spill] sm:$0xff] }
 0x451   : > { %v3236_v12 = vpop.eup %3235  ;;  %2433 = vst [vmem:[%s4136_s23 + $0x170] sm:$0xff] %v2369_v53  ;;  %v4348_v53 = vld [vmem:[#allocation11_spill] sm:$0xff] }
 0x452   : > { %v3238_v28 = vpop.eup %3237  ;;  %v2370_v43 = vmul.f32 %v3236_v12, %v4064_v14  ;;  %v2230_v45 = vpop.xlane.xlu1 %2229 }
 0x453   : > { %v2367_v36 = vmul.f32 %v3238_v28, %v4339_v17  ;;  %3247 = vrcp.f32 %v2230_v45  ;;  %v2240_v26 = vpop.xlane.xlu0 %2239 }
 0x454   : > { %2434 = vst [vmem:[%s4136_s23 + $0x178] sm:$0xff] %v2370_v43  ;;  %3249 = vrcp.f32 %v2240_v26 }
 0x455   : > { %v3240_v51 = vpop.eup %3239  ;;  %2431 = vst [vmem:[%s4136_s23 + $0x160] sm:$0xff] %v2367_v36 }
 0x456   : > { %v3242_v48 = vpop.eup %3241  ;;  %v2368_v8 = vmul.f32 %v3240_v51, %v4340_v25  ;;  %v2242_v21 = vpop.xlane.xlu1 %2241 }
 0x457   : > { %v2373_v10 = vmul.f32 %v3242_v48, %v4341_v22  ;;  %3251 = vrcp.f32 %v2242_v21  ;;  %v2236_v14 = vpop.xlane.xlu0 %2235 }
 0x458   : > { %2432 = vst [vmem:[%s4136_s23 + $0x168] sm:$0xff] %v2368_v8  ;;  %3253 = vrcp.f32 %v2236_v14 }
 0x459   : > { %v3244_v60 = vpop.eup %3243  ;;  %2437 = vst [vmem:[%s4136_s23 + $0x190] sm:$0xff] %v2373_v10 }
 0x45a   : > { %v3246_v54 = vpop.eup %3245  ;;  %v2374_v2 = vmul.f32 %v3244_v60, %v4342_v63  ;;  %v2238_v31 = vpop.xlane.xlu1 %2237 }
 0x45b   : > { %v2371_v50 = vmul.f32 %v3246_v54, %v4343_v56  ;;  %3255 = vrcp.f32 %v2238_v31  ;;  %v2248_v32 = vpop.xlane.xlu0 %2247 }
 0x45c   : > { %2438 = vst [vmem:[%s4136_s23 + $0x198] sm:$0xff] %v2374_v2  ;;  %3257 = vrcp.f32 %v2248_v32 }
 0x45d   : > { %v3248_v49 = vpop.eup %3247  ;;  %2435 = vst [vmem:[%s4136_s23 + $0x180] sm:$0xff] %v2371_v50 }
 0x45e   : > { %v3250_v59 = vpop.eup %3249  ;;  %v2372_v27 = vmul.f32 %v3248_v49, %v4344_v37  ;;  %v2250_v24 = vpop.xlane.xlu1 %2249 }
 0x45f   : > { %v2377_v19 = vmul.f32 %v3250_v59, %v4345_v61  ;;  %3259 = vrcp.f32 %v2250_v24  ;;  %v2244_v1 = vpop.xlane.xlu0 %2243 }
 0x460   : > { %2436 = vst [vmem:[%s4136_s23 + $0x188] sm:$0xff] %v2372_v27  ;;  %3261 = vrcp.f32 %v2244_v1 }
 0x461   : > { %v3252_v42 = vpop.eup %3251  ;;  %2441 = vst [vmem:[%s4136_s23 + $0x1b0] sm:$0xff] %v2377_v19 }
 0x462   : > { %v3254_v33 = vpop.eup %3253  ;;  %v2378_v46 = vmul.f32 %v3252_v42, %v4095_v55  ;;  %v2246_v62 = vpop.xlane.xlu1 %2245 }
 0x463   : > { %v2375_v35 = vmul.f32 %v3254_v33, %v4346_v30  ;;  %3263 = vrcp.f32 %v2246_v62 }
 0x464   : > { %2442 = vst [vmem:[%s4136_s23 + $0x1b8] sm:$0xff] %v2378_v46 }
 0x465   : > { %v3256_v7 = vpop.eup %3255  ;;  %2439 = vst [vmem:[%s4136_s23 + $0x1a0] sm:$0xff] %v2375_v35 }
 0x466   : > { %v3258_v38 = vpop.eup %3257  ;;  %v2376_v9 = vmul.f32 %v3256_v7, %v4103_v16 }
 0x467   : > { %v2381_v20 = vmul.f32 %v3258_v38, %v4107_v4  ;;  %v2252_v29 = vpop.xlane.xlu0 %2251 }
 0x468   : > { %2440 = vst [vmem:[%s4136_s23 + $0x1a8] sm:$0xff] %v2376_v9  ;;  %3265 = vrcp.f32 %v2252_v29  ;;  %v2254_v3 = vpop.xlane.xlu1 %2253 }
 0x469   : > { %v3260_v55 = vpop.eup %3259  ;;  %2445 = vst [vmem:[%s4136_s23 + $0x1d0] sm:$0xff] %v2381_v20  ;;  %3267 = vrcp.f32 %v2254_v3 }
 0x46a   : > { %v3262_v58 = vpop.eup %3261  ;;  %v2382_v23 = vmul.f32 %v3260_v55, %v4111_v52 }
 0x46b   : > { %v2379_v18 = vmul.f32 %v3262_v58, %v4113_v47  ;;  %v2256_v13 = vpop.xlane.xlu0 %2255 }
 0x46c   : > { %2446 = vst [vmem:[%s4136_s23 + $0x1d8] sm:$0xff] %v2382_v23  ;;  %3269 = vrcp.f32 %v2256_v13  ;;  %v2258_v4 = vpop.xlane.xlu1 %2257 }
 0x46d   : > { %v3264_v16 = vpop.eup %3263  ;;  %2443 = vst [vmem:[%s4136_s23 + $0x1c0] sm:$0xff] %v2379_v18  ;;  %3271 = vrcp.f32 %v2258_v4 }
 0x46e   : > { %v2380_v40 = vmul.f32 %v3264_v16, %v4117_v11 }
 0x470   : > { %2444 = vst [vmem:[%s4136_s23 + $0x1c8] sm:$0xff] %v2380_v40 }
 0x472   : > { %v3266_v44 = vpop.eup %3265 }
 0x473   : > { %v3268_v0 = vpop.eup %3267  ;;  %v2383_v39 = vmul.f32 %v3266_v44, %v4120_v34 }
 0x474   : > { %v2384_v52 = vmul.f32 %v3268_v0, %v4122_v57 }
 0x475   : > { %2447 = vst [vmem:[%s4136_s23 + $0x1e0] sm:$0xff] %v2383_v39 }
 0x476   : > { %v3270_v47 = vpop.eup %3269  ;;  %2448 = vst [vmem:[%s4136_s23 + $0x1e8] sm:$0xff] %v2384_v52 }
 0x477   : > { %v3272_v41 = vpop.eup %3271  ;;  %v2385_v5 = vmul.f32 %v3270_v47, %v4347_v6 }
 0x478   : > { %v2386_v15 = vmul.f32 %v3272_v41, %v4348_v53 }
 0x479   : > { %2449 = vst [vmem:[%s4136_s23 + $0x1f0] sm:$0xff] %v2385_v5 }
 0x47a   : > { %2450 = vst [vmem:[%s4136_s23 + $0x1f8] sm:$0xff] %v2386_v15 }
 0x47b PF: > { %s17_s24 = sadd.s32 1, %s3279_s24  }
 0x47c   : > { %p14_p4 = scmp.ge.s32.totalorder %s17_s24, 4  }
 0x47e   :  { %16 = sbr.rel (!%p14_p4) target bundleno = 1 (0x1), region = 78 }

</bundles_post_ra>
